<compile_context>
chip_gen: v6e
topology: v6e:2x2x1
jax: 0.10.0
libtpu: 0.0.40
codegen_flags: <defaults>
</compile_context>

<pallas_src>
import functools

import jax
import jax.numpy as jnp
from jax.experimental import pallas as pl
from jax.experimental.pallas import tpu as pltpu


# ----------------------------------------------------------------------------
# Packed-slab layout (single source of truth for wrapper + kernel).
# All rows are h_dim lanes wide; n_ctrl-sized pieces are zero-padded to h.
# Every piece starts at an 8-row (sublane-tile) aligned offset.
# ----------------------------------------------------------------------------
def _mlp_slab_layout(n_state, n_ctrl, h):
    del n_ctrl  # padded to h on the host
    rows = [
        ("se_w0", n_state), ("se_w1", h), ("se_w2", h),
        ("se_b0", 1), ("se_b1", 1), ("se_b2", 1),
        ("ce_w0", h), ("ce_w1", h), ("ce_w2", h),      # ce_w0: pre-scaled + padded
        ("ce_b0", 1), ("ce_b1", 1), ("ce_b2", 1),
        ("de_w0", h), ("de_w1", h), ("de_w2", h),      # de_w2: padded (h, h)
        ("de_b0", 1), ("de_b1", 1), ("de_b2", 1),      # de_b2: padded (1, h)
    ]
    lay = {}
    off = 0
    for name, r in rows:
        lay[name] = (off, r)
        off += -(-r // 8) * 8      # 8-row sublane alignment for every piece
    return lay, off


def rnn_kernel(x_ref, mlp_ref, lstm_ref, out_ref, *,
               n_state, n_ctrl, h_dim, T, scalar):
    B = x_ref.shape[0]
    h = h_dim
    lay, _ = _mlp_slab_layout(n_state, n_ctrl, h)

    def w(name):                       # weight block (static, tile-aligned slice)
        o, r = lay[name]
        return mlp_ref[o:o + r, :]

    def b(name):                       # bias row, broadcast to (B, h) once
        o, _ = lay[name]
        return jnp.broadcast_to(mlp_ref[o:o + 1, :], (B, h))

    # ---- hoist every weight / bias load out of the unrolled time loop -------
    se_w0, se_w1, se_w2 = w("se_w0"), w("se_w1"), w("se_w2")
    se_b0, se_b1, se_b2 = b("se_b0"), b("se_b1"), b("se_b2")
    ce_w0, ce_w1, ce_w2 = w("ce_w0"), w("ce_w1"), w("ce_w2")   # ce_w0 has `scalar` folded in
    ce_b0, ce_b1, ce_b2 = b("ce_b0"), b("ce_b1"), b("ce_b2")
    de_w0, de_w1, de_w2 = w("de_w0"), w("de_w1"), w("de_w2")   # de_w2 zero-padded to (h, h)
    de_b0, de_b1, de_b2 = b("de_b0"), b("de_b1"), b("de_b2")   # de_b2 zero-padded to (1, h)

    w_cat = lstm_ref[0:2 * h, :]                                      # (2h, 4h) = [W_ih; W_hh]
    b_cat = jnp.broadcast_to(lstm_ref[2 * h:2 * h + 1, :], (B, 4 * h))  # b_ih + b_hh

    def mlp3(x, w0, b0, w1, b1, w2, b2):
        z = jnp.maximum(jnp.dot(x, w0, preferred_element_type=jnp.float32) + b0, 0.0)
        z = jnp.maximum(jnp.dot(z, w1, preferred_element_type=jnp.float32) + b1, 0.0)
        return jnp.dot(z, w2, preferred_element_type=jnp.float32) + b2

    # yt = state_emb(xinits)
    yt = mlp3(x_ref[...].astype(jnp.float32),
              se_w0, se_b0, se_w1, se_b1, se_w2, se_b2)
    hs = jnp.zeros((B, h), jnp.float32)
    cs = jnp.zeros((B, h), jnp.float32)

    # T is a small static trip count; the unrolled loop keeps state in vregs.
    for t in range(T):
        # Fused LSTM gates: [yt, h] @ [W_ih; W_hh] + (b_ih + b_hh); order (i,f,g,o).
        if t == 0:
            # h0 == 0: only the W_ih half contributes (exact; skips the concat
            # and half the gate matmul on step 0).
            gates = jnp.dot(yt, w_cat[:h, :],
                            preferred_element_type=jnp.float32) + b_cat
        else:
            yh = jnp.concatenate([yt, hs], axis=1)                  # (B, 2h)
            gates = jnp.dot(yh, w_cat,
                            preferred_element_type=jnp.float32) + b_cat
        sg = jax.nn.sigmoid(gates)      # one full-width EUP push
        tg = jnp.tanh(gates)            # one full-width EUP push
        i_g = sg[:, 0 * h:1 * h]
        f_g = sg[:, 1 * h:2 * h]
        g_g = tg[:, 2 * h:3 * h]
        o_g = sg[:, 3 * h:4 * h]
        if t == 0:
            cs = i_g * g_g              # c0 == 0: f*c term is exactly zero
        else:
            cs = f_g * cs + i_g * g_g
        hs = o_g * jnp.tanh(cs)

        # decode(ct): padded output columns (>= n_ctrl) are exactly zero.
        u_raw = jnp.tanh(mlp3(cs, de_w0, de_b0, de_w1, de_b1, de_w2, de_b2))

        # ut = decode(ct) * scalar  (scalar only on the off-critical-path store).
        out_ref[t, :, :] = (u_raw[:, :n_ctrl] * scalar).astype(out_ref.dtype)

        # yt = ctrl_emb(ut): `scalar` is folded into ce_w0 and u_raw's padded
        # columns hit zero rows of ce_w0, so this equals ctrl_emb(ut) exactly.
        # The last step's ctrl_emb does not affect the output -> skipped.
        if t + 1 < T:
            yt = mlp3(u_raw, ce_w0, ce_b0, ce_w1, ce_b1, ce_w2, ce_b2)


# ----------------------------------------------------------------------------
# Host-side weight packing: 22 arrays -> 2 slabs (2 DMAs) + xinits.
# ----------------------------------------------------------------------------
def pack_params(params, n_state, n_ctrl, h_dim, scalar):
    h = h_dim
    f32 = jnp.float32
    pieces = {k: v.astype(f32) for k, v in params.items()}
    # Fold the `* scalar` of the ctrl_emb input into ce_w0 and zero-pad the
    # n_ctrl-sized dims up to h so the kernel's chain stays h lanes wide.
    pieces["ce_w0"] = jnp.concatenate(
        [params["ce_w0"].astype(f32) * scalar, jnp.zeros((h - n_ctrl, h), f32)], axis=0)
    pieces["de_w2"] = jnp.concatenate(
        [params["de_w2"].astype(f32), jnp.zeros((h, h - n_ctrl), f32)], axis=1)
    pieces["de_b2"] = jnp.concatenate(
        [params["de_b2"].astype(f32), jnp.zeros((1, h - n_ctrl), f32)], axis=1)

    lay, total_rows = _mlp_slab_layout(n_state, n_ctrl, h)
    mlp_slab = jnp.zeros((total_rows, h), f32)
    for name, (off, r) in lay.items():
        assert pieces[name].shape == (r, h), (name, pieces[name].shape)
        mlp_slab = mlp_slab.at[off:off + r, :].set(pieces[name])

    w_cat = jnp.concatenate([params["w_ih"], params["w_hh"]], axis=0)   # (2h, 4h)
    b_cat = params["b_ih"] + params["b_hh"]                             # (1, 4h)
    lstm_slab = jnp.concatenate([w_cat, b_cat], axis=0).astype(f32)     # (2h+1, 4h)
    return mlp_slab, lstm_slab


@functools.partial(jax.jit, static_argnames=("T", "scalar"))
def rnn_forward(xinits, params, T, scalar=2.0):
    B, n_state = xinits.shape
    h_dim = params["se_w0"].shape[1]
    n_ctrl = params["de_w2"].shape[1]
    mlp_slab, lstm_slab = pack_params(params, n_state, n_ctrl, h_dim, scalar)

    vmem = pl.BlockSpec(memory_space=pltpu.MemorySpace.VMEM)
    kernel = functools.partial(rnn_kernel, n_state=n_state, n_ctrl=n_ctrl,
                               h_dim=h_dim, T=T, scalar=scalar)
    out_tbc = pl.pallas_call(
        kernel,
        out_shape=jax.ShapeDtypeStruct((T, B, n_ctrl), jnp.float32),
        in_specs=[vmem, vmem, vmem],
        out_specs=vmem,
    )(xinits.astype(jnp.float32), mlp_slab, lstm_slab)
    # (T,B,C) -> (B,T,C): tiny transpose fused into this same jitted program
    # (no separate dispatch).  Matches torch.stack(uts, dim=1).
    return jnp.transpose(out_tbc, (1, 0, 2))


# ----------------------------------------------------------------------------
# Pure-JAX reference with the original (unfused) semantics, for correctness.
# ----------------------------------------------------------------------------
def rnn_reference(xinits, params, T, scalar=2.0):
    def lin(x, w, b):
        return x @ w + b

    def mlp3(x, p, pre):
        z = jnp.maximum(lin(x, p[pre + "_w0"], p[pre + "_b0"]), 0.0)
        z = jnp.maximum(lin(z, p[pre + "_w1"], p[pre + "_b1"]), 0.0)
        return lin(z, p[pre + "_w2"], p[pre + "_b2"])

    h_dim = params["se_w0"].shape[1]
    B = xinits.shape[0]
    yt = mlp3(xinits.astype(jnp.float32), params, "se")
    h = jnp.zeros((B, h_dim), jnp.float32)
    c = jnp.zeros((B, h_dim), jnp.float32)
    uts = []
    for _ in range(T):
        gates = yt @ params["w_ih"] + params["b_ih"] + h @ params["w_hh"] + params["b_hh"]
        i_g = jax.nn.sigmoid(gates[:, 0 * h_dim:1 * h_dim])
        f_g = jax.nn.sigmoid(gates[:, 1 * h_dim:2 * h_dim])
        g_g = jnp.tanh(gates[:, 2 * h_dim:3 * h_dim])
        o_g = jax.nn.sigmoid(gates[:, 3 * h_dim:4 * h_dim])
        c = f_g * c + i_g * g_g
        h = o_g * jnp.tanh(c)
        ut = jnp.tanh(mlp3(c, params, "de")) * scalar
        uts.append(ut)
        yt = mlp3(ut, params, "ce")
    return jnp.stack(uts, axis=1)


def init_params(key, n_state, n_ctrl, h_dim):
    """Deterministic synthetic weights; (in, out) layout, biases (1, out)."""
    names_shapes = [
        ("se_w0", (n_state, h_dim)), ("se_b0", (1, h_dim)),
        ("se_w1", (h_dim, h_dim)), ("se_b1", (1, h_dim)),
        ("se_w2", (h_dim, h_dim)), ("se_b2", (1, h_dim)),
        ("ce_w0", (n_ctrl, h_dim)), ("ce_b0", (1, h_dim)),
        ("ce_w1", (h_dim, h_dim)), ("ce_b1", (1, h_dim)),
        ("ce_w2", (h_dim, h_dim)), ("ce_b2", (1, h_dim)),
        ("de_w0", (h_dim, h_dim)), ("de_b0", (1, h_dim)),
        ("de_w1", (h_dim, h_dim)), ("de_b1", (1, h_dim)),
        ("de_w2", (h_dim, n_ctrl)), ("de_b2", (1, n_ctrl)),
        ("w_ih", (h_dim, 4 * h_dim)), ("w_hh", (h_dim, 4 * h_dim)),
        ("b_ih", (1, 4 * h_dim)), ("b_hh", (1, 4 * h_dim)),
    ]
    params = {}
    keys = jax.random.split(key, len(names_shapes))
    for k, (name, shape) in zip(keys, names_shapes):
        params[name] = 0.2 * jax.random.normal(k, shape, dtype=jnp.float32)
    return params


if __name__ == "__main__":
    n_state, n_ctrl, h_dim, T = 4, 2, 32, 8
    B = 4
    scalar = 2.0

    root = jax.random.PRNGKey(0)
    k_x, k_p = jax.random.split(root)
    xinits = jax.random.normal(k_x, (B, n_state), dtype=jnp.float32)
    params = init_params(k_p, n_state, n_ctrl, h_dim)

    out = rnn_forward(xinits, params, T=T, scalar=scalar)
    out = jax.block_until_ready(out)

    ref = jax.block_until_ready(rnn_reference(xinits, params, T, scalar=scalar))
    assert out.shape == (B, T, n_ctrl)
    # Tolerance slightly loosened: gate-matmul fusion / bias pre-add change f32
    # summation order by O(1e-6).
    assert jnp.allclose(out, ref, rtol=1e-5, atol=2e-5), "mismatch vs JAX reference"

    print("KERNEL_OK")
</pallas_src>

<mosaic_0001>
module attributes {stable_mosaic.version = 11 : i64} {
  func.func @rnn_kernel(%arg0: memref<4x4xf32, #tpu.memory_space<vmem>>, %arg1: memref<336x32xf32, #tpu.memory_space<vmem>>, %arg2: memref<65x128xf32, #tpu.memory_space<vmem>>, %arg3: memref<8x4x2xf32, #tpu.memory_space<vmem>>) attributes {dimension_semantics = [], scalar_prefetch = 0 : i64, scratch_operands = 0 : i64, tpu.core_type = #tpu.core_type<tc>} {
    %c0 = arith.constant 0 : index
    %c0_0 = arith.constant 0 : index
    %0 = vector.load %arg1[%c0, %c0_0] : memref<336x32xf32, #tpu.memory_space<vmem>>, vector<4x32xf32>
    %c8 = arith.constant 8 : index
    %c0_1 = arith.constant 0 : index
    %1 = vector.load %arg1[%c8, %c0_1] : memref<336x32xf32, #tpu.memory_space<vmem>>, vector<32x32xf32>
    %c40 = arith.constant 40 : index
    %c0_2 = arith.constant 0 : index
    %2 = vector.load %arg1[%c40, %c0_2] : memref<336x32xf32, #tpu.memory_space<vmem>>, vector<32x32xf32>
    %c72 = arith.constant 72 : index
    %c0_3 = arith.constant 0 : index
    %3 = vector.load %arg1[%c72, %c0_3] : memref<336x32xf32, #tpu.memory_space<vmem>>, vector<1x32xf32>
    %4 = vector.shape_cast %3 : vector<1x32xf32> to vector<1x32xf32>
    %5 = vector.broadcast %4 : vector<1x32xf32> to vector<4x32xf32>
    %c80 = arith.constant 80 : index
    %c0_4 = arith.constant 0 : index
    %6 = vector.load %arg1[%c80, %c0_4] : memref<336x32xf32, #tpu.memory_space<vmem>>, vector<1x32xf32>
    %7 = vector.shape_cast %6 : vector<1x32xf32> to vector<1x32xf32>
    %8 = vector.broadcast %7 : vector<1x32xf32> to vector<4x32xf32>
    %c88 = arith.constant 88 : index
    %c0_5 = arith.constant 0 : index
    %9 = vector.load %arg1[%c88, %c0_5] : memref<336x32xf32, #tpu.memory_space<vmem>>, vector<1x32xf32>
    %10 = vector.shape_cast %9 : vector<1x32xf32> to vector<1x32xf32>
    %11 = vector.broadcast %10 : vector<1x32xf32> to vector<4x32xf32>
    %c96 = arith.constant 96 : index
    %c0_6 = arith.constant 0 : index
    %12 = vector.load %arg1[%c96, %c0_6] : memref<336x32xf32, #tpu.memory_space<vmem>>, vector<32x32xf32>
    %c128 = arith.constant 128 : index
    %c0_7 = arith.constant 0 : index
    %13 = vector.load %arg1[%c128, %c0_7] : memref<336x32xf32, #tpu.memory_space<vmem>>, vector<32x32xf32>
    %c160 = arith.constant 160 : index
    %c0_8 = arith.constant 0 : index
    %14 = vector.load %arg1[%c160, %c0_8] : memref<336x32xf32, #tpu.memory_space<vmem>>, vector<32x32xf32>
    %c192 = arith.constant 192 : index
    %c0_9 = arith.constant 0 : index
    %15 = vector.load %arg1[%c192, %c0_9] : memref<336x32xf32, #tpu.memory_space<vmem>>, vector<1x32xf32>
    %16 = vector.shape_cast %15 : vector<1x32xf32> to vector<1x32xf32>
    %17 = vector.broadcast %16 : vector<1x32xf32> to vector<4x32xf32>
    %c200 = arith.constant 200 : index
    %c0_10 = arith.constant 0 : index
    %18 = vector.load %arg1[%c200, %c0_10] : memref<336x32xf32, #tpu.memory_space<vmem>>, vector<1x32xf32>
    %19 = vector.shape_cast %18 : vector<1x32xf32> to vector<1x32xf32>
    %20 = vector.broadcast %19 : vector<1x32xf32> to vector<4x32xf32>
    %c208 = arith.constant 208 : index
    %c0_11 = arith.constant 0 : index
    %21 = vector.load %arg1[%c208, %c0_11] : memref<336x32xf32, #tpu.memory_space<vmem>>, vector<1x32xf32>
    %22 = vector.shape_cast %21 : vector<1x32xf32> to vector<1x32xf32>
    %23 = vector.broadcast %22 : vector<1x32xf32> to vector<4x32xf32>
    %c216 = arith.constant 216 : index
    %c0_12 = arith.constant 0 : index
    %24 = vector.load %arg1[%c216, %c0_12] : memref<336x32xf32, #tpu.memory_space<vmem>>, vector<32x32xf32>
    %c248 = arith.constant 248 : index
    %c0_13 = arith.constant 0 : index
    %25 = vector.load %arg1[%c248, %c0_13] : memref<336x32xf32, #tpu.memory_space<vmem>>, vector<32x32xf32>
    %c280 = arith.constant 280 : index
    %c0_14 = arith.constant 0 : index
    %26 = vector.load %arg1[%c280, %c0_14] : memref<336x32xf32, #tpu.memory_space<vmem>>, vector<32x32xf32>
    %c312 = arith.constant 312 : index
    %c0_15 = arith.constant 0 : index
    %27 = vector.load %arg1[%c312, %c0_15] : memref<336x32xf32, #tpu.memory_space<vmem>>, vector<1x32xf32>
    %28 = vector.shape_cast %27 : vector<1x32xf32> to vector<1x32xf32>
    %29 = vector.broadcast %28 : vector<1x32xf32> to vector<4x32xf32>
    %c320 = arith.constant 320 : index
    %c0_16 = arith.constant 0 : index
    %30 = vector.load %arg1[%c320, %c0_16] : memref<336x32xf32, #tpu.memory_space<vmem>>, vector<1x32xf32>
    %31 = vector.shape_cast %30 : vector<1x32xf32> to vector<1x32xf32>
    %32 = vector.broadcast %31 : vector<1x32xf32> to vector<4x32xf32>
    %c328 = arith.constant 328 : index
    %c0_17 = arith.constant 0 : index
    %33 = vector.load %arg1[%c328, %c0_17] : memref<336x32xf32, #tpu.memory_space<vmem>>, vector<1x32xf32>
    %34 = vector.shape_cast %33 : vector<1x32xf32> to vector<1x32xf32>
    %35 = vector.broadcast %34 : vector<1x32xf32> to vector<4x32xf32>
    %c0_18 = arith.constant 0 : index
    %c0_19 = arith.constant 0 : index
    %36 = vector.load %arg2[%c0_18, %c0_19] : memref<65x128xf32, #tpu.memory_space<vmem>>, vector<64x128xf32>
    %c64 = arith.constant 64 : index
    %c0_20 = arith.constant 0 : index
    %37 = vector.load %arg2[%c64, %c0_20] : memref<65x128xf32, #tpu.memory_space<vmem>>, vector<1x128xf32>
    %38 = vector.shape_cast %37 : vector<1x128xf32> to vector<1x128xf32>
    %39 = vector.broadcast %38 : vector<1x128xf32> to vector<4x128xf32>
    %c0_21 = arith.constant 0 : index
    %c0_22 = arith.constant 0 : index
    %40 = vector.load %arg0[%c0_21, %c0_22] : memref<4x4xf32, #tpu.memory_space<vmem>>, vector<4x4xf32>
    %cst = arith.constant dense<0.000000e+00> : vector<4x32xf32>
    %41 = tpu.matmul %40, %0, %cst {dimension_numbers = #tpu.dot_dimension_numbers<[1], [0], [0], [1], [0, 0, 1, 1], [], []>} : vector<4x4xf32>, vector<4x32xf32>, vector<4x32xf32> -> vector<4x32xf32>
    %42 = arith.addf %41, %5 : vector<4x32xf32>
    %cst_23 = arith.constant 0.000000e+00 : f32
    %43 = vector.broadcast %cst_23 : f32 to vector<4x32xf32>
    %44 = arith.maximumf %42, %43 : vector<4x32xf32>
    %cst_24 = arith.constant dense<0.000000e+00> : vector<4x32xf32>
    %45 = tpu.matmul %44, %1, %cst_24 {dimension_numbers = #tpu.dot_dimension_numbers<[1], [0], [0], [1], [0, 0, 1, 1], [], []>} : vector<4x32xf32>, vector<32x32xf32>, vector<4x32xf32> -> vector<4x32xf32>
    %46 = arith.addf %45, %8 : vector<4x32xf32>
    %cst_25 = arith.constant 0.000000e+00 : f32
    %47 = vector.broadcast %cst_25 : f32 to vector<4x32xf32>
    %48 = arith.maximumf %46, %47 : vector<4x32xf32>
    %cst_26 = arith.constant dense<0.000000e+00> : vector<4x32xf32>
    %49 = tpu.matmul %48, %2, %cst_26 {dimension_numbers = #tpu.dot_dimension_numbers<[1], [0], [0], [1], [0, 0, 1, 1], [], []>} : vector<4x32xf32>, vector<32x32xf32>, vector<4x32xf32> -> vector<4x32xf32>
    %50 = arith.addf %49, %11 : vector<4x32xf32>
    %51 = vector.extract_strided_slice %36 {offsets = [0, 0], sizes = [32, 128], strides = [1, 1]} : vector<64x128xf32> to vector<32x128xf32>
    %cst_27 = arith.constant dense<0.000000e+00> : vector<4x128xf32>
    %52 = tpu.matmul %50, %51, %cst_27 {dimension_numbers = #tpu.dot_dimension_numbers<[1], [0], [0], [1], [0, 0, 1, 1], [], []>} : vector<4x32xf32>, vector<32x128xf32>, vector<4x128xf32> -> vector<4x128xf32>
    %53 = arith.addf %52, %39 : vector<4x128xf32>
    %54 = arith.negf %53 : vector<4x128xf32>
    %55 = math.exp %54 : vector<4x128xf32>
    %cst_28 = arith.constant 1.000000e+00 : f32
    %56 = vector.broadcast %cst_28 : f32 to vector<4x128xf32>
    %57 = arith.addf %56, %55 : vector<4x128xf32>
    %58 = arith.divf %56, %57 : vector<4x128xf32>
    %59 = math.tanh %53 : vector<4x128xf32>
    %60 = vector.extract_strided_slice %58 {offsets = [0, 0], sizes = [4, 32], strides = [1, 1]} : vector<4x128xf32> to vector<4x32xf32>
    %61 = vector.extract_strided_slice %59 {offsets = [0, 64], sizes = [4, 32], strides = [1, 1]} : vector<4x128xf32> to vector<4x32xf32>
    %62 = vector.extract_strided_slice %58 {offsets = [0, 96], sizes = [4, 32], strides = [1, 1]} : vector<4x128xf32> to vector<4x32xf32>
    %63 = arith.mulf %60, %61 : vector<4x32xf32>
    %64 = math.tanh %63 : vector<4x32xf32>
    %65 = arith.mulf %62, %64 : vector<4x32xf32>
    %cst_29 = arith.constant dense<0.000000e+00> : vector<4x32xf32>
    %66 = tpu.matmul %63, %24, %cst_29 {dimension_numbers = #tpu.dot_dimension_numbers<[1], [0], [0], [1], [0, 0, 1, 1], [], []>} : vector<4x32xf32>, vector<32x32xf32>, vector<4x32xf32> -> vector<4x32xf32>
    %67 = arith.addf %66, %29 : vector<4x32xf32>
    %cst_30 = arith.constant 0.000000e+00 : f32
    %68 = vector.broadcast %cst_30 : f32 to vector<4x32xf32>
    %69 = arith.maximumf %67, %68 : vector<4x32xf32>
    %cst_31 = arith.constant dense<0.000000e+00> : vector<4x32xf32>
    %70 = tpu.matmul %69, %25, %cst_31 {dimension_numbers = #tpu.dot_dimension_numbers<[1], [0], [0], [1], [0, 0, 1, 1], [], []>} : vector<4x32xf32>, vector<32x32xf32>, vector<4x32xf32> -> vector<4x32xf32>
    %71 = arith.addf %70, %32 : vector<4x32xf32>
    %cst_32 = arith.constant 0.000000e+00 : f32
    %72 = vector.broadcast %cst_32 : f32 to vector<4x32xf32>
    %73 = arith.maximumf %71, %72 : vector<4x32xf32>
    %cst_33 = arith.constant dense<0.000000e+00> : vector<4x32xf32>
    %74 = tpu.matmul %73, %26, %cst_33 {dimension_numbers = #tpu.dot_dimension_numbers<[1], [0], [0], [1], [0, 0, 1, 1], [], []>} : vector<4x32xf32>, vector<32x32xf32>, vector<4x32xf32> -> vector<4x32xf32>
    %75 = arith.addf %74, %35 : vector<4x32xf32>
    %76 = math.tanh %75 : vector<4x32xf32>
    %77 = vector.extract_strided_slice %76 {offsets = [0, 0], sizes = [4, 2], strides = [1, 1]} : vector<4x32xf32> to vector<4x2xf32>
    %cst_34 = arith.constant 2.000000e+00 : f32
    %78 = vector.broadcast %cst_34 : f32 to vector<4x2xf32>
    %79 = arith.mulf %77, %78 : vector<4x2xf32>
    %c0_35 = arith.constant 0 : index
    %c0_36 = arith.constant 0 : index
    %c0_37 = arith.constant 0 : index
    %80 = vector.load %arg3[%c0_35, %c0_36, %c0_37] : memref<8x4x2xf32, #tpu.memory_space<vmem>>, vector<1x4x2xf32>
    %81 = vector.shape_cast %80 : vector<1x4x2xf32> to vector<4x2xf32>
    %82 = vector.shape_cast %79 : vector<4x2xf32> to vector<1x4x2xf32>
    tpu.vector_store %arg3[%c0_35, %c0_36, %c0_37], %82 {strides = array<i32>} : memref<8x4x2xf32, #tpu.memory_space<vmem>>, vector<1x4x2xf32>,
    %cst_38 = arith.constant dense<0.000000e+00> : vector<4x32xf32>
    %83 = tpu.matmul %76, %12, %cst_38 {dimension_numbers = #tpu.dot_dimension_numbers<[1], [0], [0], [1], [0, 0, 1, 1], [], []>} : vector<4x32xf32>, vector<32x32xf32>, vector<4x32xf32> -> vector<4x32xf32>
    %84 = arith.addf %83, %17 : vector<4x32xf32>
    %cst_39 = arith.constant 0.000000e+00 : f32
    %85 = vector.broadcast %cst_39 : f32 to vector<4x32xf32>
    %86 = arith.maximumf %84, %85 : vector<4x32xf32>
    %cst_40 = arith.constant dense<0.000000e+00> : vector<4x32xf32>
    %87 = tpu.matmul %86, %13, %cst_40 {dimension_numbers = #tpu.dot_dimension_numbers<[1], [0], [0], [1], [0, 0, 1, 1], [], []>} : vector<4x32xf32>, vector<32x32xf32>, vector<4x32xf32> -> vector<4x32xf32>
    %88 = arith.addf %87, %20 : vector<4x32xf32>
    %cst_41 = arith.constant 0.000000e+00 : f32
    %89 = vector.broadcast %cst_41 : f32 to vector<4x32xf32>
    %90 = arith.maximumf %88, %89 : vector<4x32xf32>
    %cst_42 = arith.constant dense<0.000000e+00> : vector<4x32xf32>
    %91 = tpu.matmul %90, %14, %cst_42 {dimension_numbers = #tpu.dot_dimension_numbers<[1], [0], [0], [1], [0, 0, 1, 1], [], []>} : vector<4x32xf32>, vector<32x32xf32>, vector<4x32xf32> -> vector<4x32xf32>
    %92 = arith.addf %91, %23 : vector<4x32xf32>
    %93 = tpu.concatenate %92, %65 in 1 : vector<4x32xf32>, vector<4x32xf32> -> vector<4x64xf32>
    %cst_43 = arith.constant dense<0.000000e+00> : vector<4x128xf32>
    %94 = tpu.matmul %93, %36, %cst_43 {dimension_numbers = #tpu.dot_dimension_numbers<[1], [0], [0], [1], [0, 0, 1, 1], [], []>} : vector<4x64xf32>, vector<64x128xf32>, vector<4x128xf32> -> vector<4x128xf32>
    %95 = arith.addf %94, %39 : vector<4x128xf32>
    %96 = arith.negf %95 : vector<4x128xf32>
    %97 = math.exp %96 : vector<4x128xf32>
    %cst_44 = arith.constant 1.000000e+00 : f32
    %98 = vector.broadcast %cst_44 : f32 to vector<4x128xf32>
    %99 = arith.addf %98, %97 : vector<4x128xf32>
    %100 = arith.divf %98, %99 : vector<4x128xf32>
    %101 = math.tanh %95 : vector<4x128xf32>
    %102 = vector.extract_strided_slice %100 {offsets = [0, 0], sizes = [4, 32], strides = [1, 1]} : vector<4x128xf32> to vector<4x32xf32>
    %103 = vector.extract_strided_slice %100 {offsets = [0, 32], sizes = [4, 32], strides = [1, 1]} : vector<4x128xf32> to vector<4x32xf32>
    %104 = vector.extract_strided_slice %101 {offsets = [0, 64], sizes = [4, 32], strides = [1, 1]} : vector<4x128xf32> to vector<4x32xf32>
    %105 = vector.extract_strided_slice %100 {offsets = [0, 96], sizes = [4, 32], strides = [1, 1]} : vector<4x128xf32> to vector<4x32xf32>
    %106 = arith.mulf %103, %63 : vector<4x32xf32>
    %107 = arith.mulf %102, %104 : vector<4x32xf32>
    %108 = arith.addf %106, %107 : vector<4x32xf32>
    %109 = math.tanh %108 : vector<4x32xf32>
    %110 = arith.mulf %105, %109 : vector<4x32xf32>
    %cst_45 = arith.constant dense<0.000000e+00> : vector<4x32xf32>
    %111 = tpu.matmul %108, %24, %cst_45 {dimension_numbers = #tpu.dot_dimension_numbers<[1], [0], [0], [1], [0, 0, 1, 1], [], []>} : vector<4x32xf32>, vector<32x32xf32>, vector<4x32xf32> -> vector<4x32xf32>
    %112 = arith.addf %111, %29 : vector<4x32xf32>
    %cst_46 = arith.constant 0.000000e+00 : f32
    %113 = vector.broadcast %cst_46 : f32 to vector<4x32xf32>
    %114 = arith.maximumf %112, %113 : vector<4x32xf32>
    %cst_47 = arith.constant dense<0.000000e+00> : vector<4x32xf32>
    %115 = tpu.matmul %114, %25, %cst_47 {dimension_numbers = #tpu.dot_dimension_numbers<[1], [0], [0], [1], [0, 0, 1, 1], [], []>} : vector<4x32xf32>, vector<32x32xf32>, vector<4x32xf32> -> vector<4x32xf32>
    %116 = arith.addf %115, %32 : vector<4x32xf32>
    %cst_48 = arith.constant 0.000000e+00 : f32
    %117 = vector.broadcast %cst_48 : f32 to vector<4x32xf32>
    %118 = arith.maximumf %116, %117 : vector<4x32xf32>
    %cst_49 = arith.constant dense<0.000000e+00> : vector<4x32xf32>
    %119 = tpu.matmul %118, %26, %cst_49 {dimension_numbers = #tpu.dot_dimension_numbers<[1], [0], [0], [1], [0, 0, 1, 1], [], []>} : vector<4x32xf32>, vector<32x32xf32>, vector<4x32xf32> -> vector<4x32xf32>
    %120 = arith.addf %119, %35 : vector<4x32xf32>
    %121 = math.tanh %120 : vector<4x32xf32>
    %122 = vector.extract_strided_slice %121 {offsets = [0, 0], sizes = [4, 2], strides = [1, 1]} : vector<4x32xf32> to vector<4x2xf32>
    %cst_50 = arith.constant 2.000000e+00 : f32
    %123 = vector.broadcast %cst_50 : f32 to vector<4x2xf32>
    %124 = arith.mulf %122, %123 : vector<4x2xf32>
    %c1 = arith.constant 1 : index
    %c0_51 = arith.constant 0 : index
    %c0_52 = arith.constant 0 : index
    %125 = vector.load %arg3[%c1, %c0_51, %c0_52] : memref<8x4x2xf32, #tpu.memory_space<vmem>>, vector<1x4x2xf32>
    %126 = vector.shape_cast %125 : vector<1x4x2xf32> to vector<4x2xf32>
    %127 = vector.shape_cast %124 : vector<4x2xf32> to vector<1x4x2xf32>
    tpu.vector_store %arg3[%c1, %c0_51, %c0_52], %127 {strides = array<i32>} : memref<8x4x2xf32, #tpu.memory_space<vmem>>, vector<1x4x2xf32>,
    %cst_53 = arith.constant dense<0.000000e+00> : vector<4x32xf32>
    %128 = tpu.matmul %121, %12, %cst_53 {dimension_numbers = #tpu.dot_dimension_numbers<[1], [0], [0], [1], [0, 0, 1, 1], [], []>} : vector<4x32xf32>, vector<32x32xf32>, vector<4x32xf32> -> vector<4x32xf32>
    %129 = arith.addf %128, %17 : vector<4x32xf32>
    %cst_54 = arith.constant 0.000000e+00 : f32
    %130 = vector.broadcast %cst_54 : f32 to vector<4x32xf32>
    %131 = arith.maximumf %129, %130 : vector<4x32xf32>
    %cst_55 = arith.constant dense<0.000000e+00> : vector<4x32xf32>
    %132 = tpu.matmul %131, %13, %cst_55 {dimension_numbers = #tpu.dot_dimension_numbers<[1], [0], [0], [1], [0, 0, 1, 1], [], []>} : vector<4x32xf32>, vector<32x32xf32>, vector<4x32xf32> -> vector<4x32xf32>
    %133 = arith.addf %132, %20 : vector<4x32xf32>
    %cst_56 = arith.constant 0.000000e+00 : f32
    %134 = vector.broadcast %cst_56 : f32 to vector<4x32xf32>
    %135 = arith.maximumf %133, %134 : vector<4x32xf32>
    %cst_57 = arith.constant dense<0.000000e+00> : vector<4x32xf32>
    %136 = tpu.matmul %135, %14, %cst_57 {dimension_numbers = #tpu.dot_dimension_numbers<[1], [0], [0], [1], [0, 0, 1, 1], [], []>} : vector<4x32xf32>, vector<32x32xf32>, vector<4x32xf32> -> vector<4x32xf32>
    %137 = arith.addf %136, %23 : vector<4x32xf32>
    %138 = tpu.concatenate %137, %110 in 1 : vector<4x32xf32>, vector<4x32xf32> -> vector<4x64xf32>
    %cst_58 = arith.constant dense<0.000000e+00> : vector<4x128xf32>
    %139 = tpu.matmul %138, %36, %cst_58 {dimension_numbers = #tpu.dot_dimension_numbers<[1], [0], [0], [1], [0, 0, 1, 1], [], []>} : vector<4x64xf32>, vector<64x128xf32>, vector<4x128xf32> -> vector<4x128xf32>
    %140 = arith.addf %139, %39 : vector<4x128xf32>
    %141 = arith.negf %140 : vector<4x128xf32>
    %142 = math.exp %141 : vector<4x128xf32>
    %cst_59 = arith.constant 1.000000e+00 : f32
    %143 = vector.broadcast %cst_59 : f32 to vector<4x128xf32>
    %144 = arith.addf %143, %142 : vector<4x128xf32>
    %145 = arith.divf %143, %144 : vector<4x128xf32>
    %146 = math.tanh %140 : vector<4x128xf32>
    %147 = vector.extract_strided_slice %145 {offsets = [0, 0], sizes = [4, 32], strides = [1, 1]} : vector<4x128xf32> to vector<4x32xf32>
    %148 = vector.extract_strided_slice %145 {offsets = [0, 32], sizes = [4, 32], strides = [1, 1]} : vector<4x128xf32> to vector<4x32xf32>
    %149 = vector.extract_strided_slice %146 {offsets = [0, 64], sizes = [4, 32], strides = [1, 1]} : vector<4x128xf32> to vector<4x32xf32>
    %150 = vector.extract_strided_slice %145 {offsets = [0, 96], sizes = [4, 32], strides = [1, 1]} : vector<4x128xf32> to vector<4x32xf32>
    %151 = arith.mulf %148, %108 : vector<4x32xf32>
    %152 = arith.mulf %147, %149 : vector<4x32xf32>
    %153 = arith.addf %151, %152 : vector<4x32xf32>
    %154 = math.tanh %153 : vector<4x32xf32>
    %155 = arith.mulf %150, %154 : vector<4x32xf32>
    %cst_60 = arith.constant dense<0.000000e+00> : vector<4x32xf32>
    %156 = tpu.matmul %153, %24, %cst_60 {dimension_numbers = #tpu.dot_dimension_numbers<[1], [0], [0], [1], [0, 0, 1, 1], [], []>} : vector<4x32xf32>, vector<32x32xf32>, vector<4x32xf32> -> vector<4x32xf32>
    %157 = arith.addf %156, %29 : vector<4x32xf32>
    %cst_61 = arith.constant 0.000000e+00 : f32
    %158 = vector.broadcast %cst_61 : f32 to vector<4x32xf32>
    %159 = arith.maximumf %157, %158 : vector<4x32xf32>
    %cst_62 = arith.constant dense<0.000000e+00> : vector<4x32xf32>
    %160 = tpu.matmul %159, %25, %cst_62 {dimension_numbers = #tpu.dot_dimension_numbers<[1], [0], [0], [1], [0, 0, 1, 1], [], []>} : vector<4x32xf32>, vector<32x32xf32>, vector<4x32xf32> -> vector<4x32xf32>
    %161 = arith.addf %160, %32 : vector<4x32xf32>
    %cst_63 = arith.constant 0.000000e+00 : f32
    %162 = vector.broadcast %cst_63 : f32 to vector<4x32xf32>
    %163 = arith.maximumf %161, %162 : vector<4x32xf32>
    %cst_64 = arith.constant dense<0.000000e+00> : vector<4x32xf32>
    %164 = tpu.matmul %163, %26, %cst_64 {dimension_numbers = #tpu.dot_dimension_numbers<[1], [0], [0], [1], [0, 0, 1, 1], [], []>} : vector<4x32xf32>, vector<32x32xf32>, vector<4x32xf32> -> vector<4x32xf32>
    %165 = arith.addf %164, %35 : vector<4x32xf32>
    %166 = math.tanh %165 : vector<4x32xf32>
    %167 = vector.extract_strided_slice %166 {offsets = [0, 0], sizes = [4, 2], strides = [1, 1]} : vector<4x32xf32> to vector<4x2xf32>
    %cst_65 = arith.constant 2.000000e+00 : f32
    %168 = vector.broadcast %cst_65 : f32 to vector<4x2xf32>
    %169 = arith.mulf %167, %168 : vector<4x2xf32>
    %c2 = arith.constant 2 : index
    %c0_66 = arith.constant 0 : index
    %c0_67 = arith.constant 0 : index
    %170 = vector.load %arg3[%c2, %c0_66, %c0_67] : memref<8x4x2xf32, #tpu.memory_space<vmem>>, vector<1x4x2xf32>
    %171 = vector.shape_cast %170 : vector<1x4x2xf32> to vector<4x2xf32>
    %172 = vector.shape_cast %169 : vector<4x2xf32> to vector<1x4x2xf32>
    tpu.vector_store %arg3[%c2, %c0_66, %c0_67], %172 {strides = array<i32>} : memref<8x4x2xf32, #tpu.memory_space<vmem>>, vector<1x4x2xf32>,
    %cst_68 = arith.constant dense<0.000000e+00> : vector<4x32xf32>
    %173 = tpu.matmul %166, %12, %cst_68 {dimension_numbers = #tpu.dot_dimension_numbers<[1], [0], [0], [1], [0, 0, 1, 1], [], []>} : vector<4x32xf32>, vector<32x32xf32>, vector<4x32xf32> -> vector<4x32xf32>
    %174 = arith.addf %173, %17 : vector<4x32xf32>
    %cst_69 = arith.constant 0.000000e+00 : f32
    %175 = vector.broadcast %cst_69 : f32 to vector<4x32xf32>
    %176 = arith.maximumf %174, %175 : vector<4x32xf32>
    %cst_70 = arith.constant dense<0.000000e+00> : vector<4x32xf32>
    %177 = tpu.matmul %176, %13, %cst_70 {dimension_numbers = #tpu.dot_dimension_numbers<[1], [0], [0], [1], [0, 0, 1, 1], [], []>} : vector<4x32xf32>, vector<32x32xf32>, vector<4x32xf32> -> vector<4x32xf32>
    %178 = arith.addf %177, %20 : vector<4x32xf32>
    %cst_71 = arith.constant 0.000000e+00 : f32
    %179 = vector.broadcast %cst_71 : f32 to vector<4x32xf32>
    %180 = arith.maximumf %178, %179 : vector<4x32xf32>
    %cst_72 = arith.constant dense<0.000000e+00> : vector<4x32xf32>
    %181 = tpu.matmul %180, %14, %cst_72 {dimension_numbers = #tpu.dot_dimension_numbers<[1], [0], [0], [1], [0, 0, 1, 1], [], []>} : vector<4x32xf32>, vector<32x32xf32>, vector<4x32xf32> -> vector<4x32xf32>
    %182 = arith.addf %181, %23 : vector<4x32xf32>
    %183 = tpu.concatenate %182, %155 in 1 : vector<4x32xf32>, vector<4x32xf32> -> vector<4x64xf32>
    %cst_73 = arith.constant dense<0.000000e+00> : vector<4x128xf32>
    %184 = tpu.matmul %183, %36, %cst_73 {dimension_numbers = #tpu.dot_dimension_numbers<[1], [0], [0], [1], [0, 0, 1, 1], [], []>} : vector<4x64xf32>, vector<64x128xf32>, vector<4x128xf32> -> vector<4x128xf32>
    %185 = arith.addf %184, %39 : vector<4x128xf32>
    %186 = arith.negf %185 : vector<4x128xf32>
    %187 = math.exp %186 : vector<4x128xf32>
    %cst_74 = arith.constant 1.000000e+00 : f32
    %188 = vector.broadcast %cst_74 : f32 to vector<4x128xf32>
    %189 = arith.addf %188, %187 : vector<4x128xf32>
    %190 = arith.divf %188, %189 : vector<4x128xf32>
    %191 = math.tanh %185 : vector<4x128xf32>
    %192 = vector.extract_strided_slice %190 {offsets = [0, 0], sizes = [4, 32], strides = [1, 1]} : vector<4x128xf32> to vector<4x32xf32>
    %193 = vector.extract_strided_slice %190 {offsets = [0, 32], sizes = [4, 32], strides = [1, 1]} : vector<4x128xf32> to vector<4x32xf32>
    %194 = vector.extract_strided_slice %191 {offsets = [0, 64], sizes = [4, 32], strides = [1, 1]} : vector<4x128xf32> to vector<4x32xf32>
    %195 = vector.extract_strided_slice %190 {offsets = [0, 96], sizes = [4, 32], strides = [1, 1]} : vector<4x128xf32> to vector<4x32xf32>
    %196 = arith.mulf %193, %153 : vector<4x32xf32>
    %197 = arith.mulf %192, %194 : vector<4x32xf32>
    %198 = arith.addf %196, %197 : vector<4x32xf32>
    %199 = math.tanh %198 : vector<4x32xf32>
    %200 = arith.mulf %195, %199 : vector<4x32xf32>
    %cst_75 = arith.constant dense<0.000000e+00> : vector<4x32xf32>
    %201 = tpu.matmul %198, %24, %cst_75 {dimension_numbers = #tpu.dot_dimension_numbers<[1], [0], [0], [1], [0, 0, 1, 1], [], []>} : vector<4x32xf32>, vector<32x32xf32>, vector<4x32xf32> -> vector<4x32xf32>
    %202 = arith.addf %201, %29 : vector<4x32xf32>
    %cst_76 = arith.constant 0.000000e+00 : f32
    %203 = vector.broadcast %cst_76 : f32 to vector<4x32xf32>
    %204 = arith.maximumf %202, %203 : vector<4x32xf32>
    %cst_77 = arith.constant dense<0.000000e+00> : vector<4x32xf32>
    %205 = tpu.matmul %204, %25, %cst_77 {dimension_numbers = #tpu.dot_dimension_numbers<[1], [0], [0], [1], [0, 0, 1, 1], [], []>} : vector<4x32xf32>, vector<32x32xf32>, vector<4x32xf32> -> vector<4x32xf32>
    %206 = arith.addf %205, %32 : vector<4x32xf32>
    %cst_78 = arith.constant 0.000000e+00 : f32
    %207 = vector.broadcast %cst_78 : f32 to vector<4x32xf32>
    %208 = arith.maximumf %206, %207 : vector<4x32xf32>
    %cst_79 = arith.constant dense<0.000000e+00> : vector<4x32xf32>
    %209 = tpu.matmul %208, %26, %cst_79 {dimension_numbers = #tpu.dot_dimension_numbers<[1], [0], [0], [1], [0, 0, 1, 1], [], []>} : vector<4x32xf32>, vector<32x32xf32>, vector<4x32xf32> -> vector<4x32xf32>
    %210 = arith.addf %209, %35 : vector<4x32xf32>
    %211 = math.tanh %210 : vector<4x32xf32>
    %212 = vector.extract_strided_slice %211 {offsets = [0, 0], sizes = [4, 2], strides = [1, 1]} : vector<4x32xf32> to vector<4x2xf32>
    %cst_80 = arith.constant 2.000000e+00 : f32
    %213 = vector.broadcast %cst_80 : f32 to vector<4x2xf32>
    %214 = arith.mulf %212, %213 : vector<4x2xf32>
    %c3 = arith.constant 3 : index
    %c0_81 = arith.constant 0 : index
    %c0_82 = arith.constant 0 : index
    %215 = vector.load %arg3[%c3, %c0_81, %c0_82] : memref<8x4x2xf32, #tpu.memory_space<vmem>>, vector<1x4x2xf32>
    %216 = vector.shape_cast %215 : vector<1x4x2xf32> to vector<4x2xf32>
    %217 = vector.shape_cast %214 : vector<4x2xf32> to vector<1x4x2xf32>
    tpu.vector_store %arg3[%c3, %c0_81, %c0_82], %217 {strides = array<i32>} : memref<8x4x2xf32, #tpu.memory_space<vmem>>, vector<1x4x2xf32>,
    %cst_83 = arith.constant dense<0.000000e+00> : vector<4x32xf32>
    %218 = tpu.matmul %211, %12, %cst_83 {dimension_numbers = #tpu.dot_dimension_numbers<[1], [0], [0], [1], [0, 0, 1, 1], [], []>} : vector<4x32xf32>, vector<32x32xf32>, vector<4x32xf32> -> vector<4x32xf32>
    %219 = arith.addf %218, %17 : vector<4x32xf32>
    %cst_84 = arith.constant 0.000000e+00 : f32
    %220 = vector.broadcast %cst_84 : f32 to vector<4x32xf32>
    %221 = arith.maximumf %219, %220 : vector<4x32xf32>
    %cst_85 = arith.constant dense<0.000000e+00> : vector<4x32xf32>
    %222 = tpu.matmul %221, %13, %cst_85 {dimension_numbers = #tpu.dot_dimension_numbers<[1], [0], [0], [1], [0, 0, 1, 1], [], []>} : vector<4x32xf32>, vector<32x32xf32>, vector<4x32xf32> -> vector<4x32xf32>
    %223 = arith.addf %222, %20 : vector<4x32xf32>
    %cst_86 = arith.constant 0.000000e+00 : f32
    %224 = vector.broadcast %cst_86 : f32 to vector<4x32xf32>
    %225 = arith.maximumf %223, %224 : vector<4x32xf32>
    %cst_87 = arith.constant dense<0.000000e+00> : vector<4x32xf32>
    %226 = tpu.matmul %225, %14, %cst_87 {dimension_numbers = #tpu.dot_dimension_numbers<[1], [0], [0], [1], [0, 0, 1, 1], [], []>} : vector<4x32xf32>, vector<32x32xf32>, vector<4x32xf32> -> vector<4x32xf32>
    %227 = arith.addf %226, %23 : vector<4x32xf32>
    %228 = tpu.concatenate %227, %200 in 1 : vector<4x32xf32>, vector<4x32xf32> -> vector<4x64xf32>
    %cst_88 = arith.constant dense<0.000000e+00> : vector<4x128xf32>
    %229 = tpu.matmul %228, %36, %cst_88 {dimension_numbers = #tpu.dot_dimension_numbers<[1], [0], [0], [1], [0, 0, 1, 1], [], []>} : vector<4x64xf32>, vector<64x128xf32>, vector<4x128xf32> -> vector<4x128xf32>
    %230 = arith.addf %229, %39 : vector<4x128xf32>
    %231 = arith.negf %230 : vector<4x128xf32>
    %232 = math.exp %231 : vector<4x128xf32>
    %cst_89 = arith.constant 1.000000e+00 : f32
    %233 = vector.broadcast %cst_89 : f32 to vector<4x128xf32>
    %234 = arith.addf %233, %232 : vector<4x128xf32>
    %235 = arith.divf %233, %234 : vector<4x128xf32>
    %236 = math.tanh %230 : vector<4x128xf32>
    %237 = vector.extract_strided_slice %235 {offsets = [0, 0], sizes = [4, 32], strides = [1, 1]} : vector<4x128xf32> to vector<4x32xf32>
    %238 = vector.extract_strided_slice %235 {offsets = [0, 32], sizes = [4, 32], strides = [1, 1]} : vector<4x128xf32> to vector<4x32xf32>
    %239 = vector.extract_strided_slice %236 {offsets = [0, 64], sizes = [4, 32], strides = [1, 1]} : vector<4x128xf32> to vector<4x32xf32>
    %240 = vector.extract_strided_slice %235 {offsets = [0, 96], sizes = [4, 32], strides = [1, 1]} : vector<4x128xf32> to vector<4x32xf32>
    %241 = arith.mulf %238, %198 : vector<4x32xf32>
    %242 = arith.mulf %237, %239 : vector<4x32xf32>
    %243 = arith.addf %241, %242 : vector<4x32xf32>
    %244 = math.tanh %243 : vector<4x32xf32>
    %245 = arith.mulf %240, %244 : vector<4x32xf32>
    %cst_90 = arith.constant dense<0.000000e+00> : vector<4x32xf32>
    %246 = tpu.matmul %243, %24, %cst_90 {dimension_numbers = #tpu.dot_dimension_numbers<[1], [0], [0], [1], [0, 0, 1, 1], [], []>} : vector<4x32xf32>, vector<32x32xf32>, vector<4x32xf32> -> vector<4x32xf32>
    %247 = arith.addf %246, %29 : vector<4x32xf32>
    %cst_91 = arith.constant 0.000000e+00 : f32
    %248 = vector.broadcast %cst_91 : f32 to vector<4x32xf32>
    %249 = arith.maximumf %247, %248 : vector<4x32xf32>
    %cst_92 = arith.constant dense<0.000000e+00> : vector<4x32xf32>
    %250 = tpu.matmul %249, %25, %cst_92 {dimension_numbers = #tpu.dot_dimension_numbers<[1], [0], [0], [1], [0, 0, 1, 1], [], []>} : vector<4x32xf32>, vector<32x32xf32>, vector<4x32xf32> -> vector<4x32xf32>
    %251 = arith.addf %250, %32 : vector<4x32xf32>
    %cst_93 = arith.constant 0.000000e+00 : f32
    %252 = vector.broadcast %cst_93 : f32 to vector<4x32xf32>
    %253 = arith.maximumf %251, %252 : vector<4x32xf32>
    %cst_94 = arith.constant dense<0.000000e+00> : vector<4x32xf32>
    %254 = tpu.matmul %253, %26, %cst_94 {dimension_numbers = #tpu.dot_dimension_numbers<[1], [0], [0], [1], [0, 0, 1, 1], [], []>} : vector<4x32xf32>, vector<32x32xf32>, vector<4x32xf32> -> vector<4x32xf32>
    %255 = arith.addf %254, %35 : vector<4x32xf32>
    %256 = math.tanh %255 : vector<4x32xf32>
    %257 = vector.extract_strided_slice %256 {offsets = [0, 0], sizes = [4, 2], strides = [1, 1]} : vector<4x32xf32> to vector<4x2xf32>
    %cst_95 = arith.constant 2.000000e+00 : f32
    %258 = vector.broadcast %cst_95 : f32 to vector<4x2xf32>
    %259 = arith.mulf %257, %258 : vector<4x2xf32>
    %c4 = arith.constant 4 : index
    %c0_96 = arith.constant 0 : index
    %c0_97 = arith.constant 0 : index
    %260 = vector.load %arg3[%c4, %c0_96, %c0_97] : memref<8x4x2xf32, #tpu.memory_space<vmem>>, vector<1x4x2xf32>
    %261 = vector.shape_cast %260 : vector<1x4x2xf32> to vector<4x2xf32>
    %262 = vector.shape_cast %259 : vector<4x2xf32> to vector<1x4x2xf32>
    tpu.vector_store %arg3[%c4, %c0_96, %c0_97], %262 {strides = array<i32>} : memref<8x4x2xf32, #tpu.memory_space<vmem>>, vector<1x4x2xf32>,
    %cst_98 = arith.constant dense<0.000000e+00> : vector<4x32xf32>
    %263 = tpu.matmul %256, %12, %cst_98 {dimension_numbers = #tpu.dot_dimension_numbers<[1], [0], [0], [1], [0, 0, 1, 1], [], []>} : vector<4x32xf32>, vector<32x32xf32>, vector<4x32xf32> -> vector<4x32xf32>
    %264 = arith.addf %263, %17 : vector<4x32xf32>
    %cst_99 = arith.constant 0.000000e+00 : f32
    %265 = vector.broadcast %cst_99 : f32 to vector<4x32xf32>
    %266 = arith.maximumf %264, %265 : vector<4x32xf32>
    %cst_100 = arith.constant dense<0.000000e+00> : vector<4x32xf32>
    %267 = tpu.matmul %266, %13, %cst_100 {dimension_numbers = #tpu.dot_dimension_numbers<[1], [0], [0], [1], [0, 0, 1, 1], [], []>} : vector<4x32xf32>, vector<32x32xf32>, vector<4x32xf32> -> vector<4x32xf32>
    %268 = arith.addf %267, %20 : vector<4x32xf32>
    %cst_101 = arith.constant 0.000000e+00 : f32
    %269 = vector.broadcast %cst_101 : f32 to vector<4x32xf32>
    %270 = arith.maximumf %268, %269 : vector<4x32xf32>
    %cst_102 = arith.constant dense<0.000000e+00> : vector<4x32xf32>
    %271 = tpu.matmul %270, %14, %cst_102 {dimension_numbers = #tpu.dot_dimension_numbers<[1], [0], [0], [1], [0, 0, 1, 1], [], []>} : vector<4x32xf32>, vector<32x32xf32>, vector<4x32xf32> -> vector<4x32xf32>
    %272 = arith.addf %271, %23 : vector<4x32xf32>
    %273 = tpu.concatenate %272, %245 in 1 : vector<4x32xf32>, vector<4x32xf32> -> vector<4x64xf32>
    %cst_103 = arith.constant dense<0.000000e+00> : vector<4x128xf32>
    %274 = tpu.matmul %273, %36, %cst_103 {dimension_numbers = #tpu.dot_dimension_numbers<[1], [0], [0], [1], [0, 0, 1, 1], [], []>} : vector<4x64xf32>, vector<64x128xf32>, vector<4x128xf32> -> vector<4x128xf32>
    %275 = arith.addf %274, %39 : vector<4x128xf32>
    %276 = arith.negf %275 : vector<4x128xf32>
    %277 = math.exp %276 : vector<4x128xf32>
    %cst_104 = arith.constant 1.000000e+00 : f32
    %278 = vector.broadcast %cst_104 : f32 to vector<4x128xf32>
    %279 = arith.addf %278, %277 : vector<4x128xf32>
    %280 = arith.divf %278, %279 : vector<4x128xf32>
    %281 = math.tanh %275 : vector<4x128xf32>
    %282 = vector.extract_strided_slice %280 {offsets = [0, 0], sizes = [4, 32], strides = [1, 1]} : vector<4x128xf32> to vector<4x32xf32>
    %283 = vector.extract_strided_slice %280 {offsets = [0, 32], sizes = [4, 32], strides = [1, 1]} : vector<4x128xf32> to vector<4x32xf32>
    %284 = vector.extract_strided_slice %281 {offsets = [0, 64], sizes = [4, 32], strides = [1, 1]} : vector<4x128xf32> to vector<4x32xf32>
    %285 = vector.extract_strided_slice %280 {offsets = [0, 96], sizes = [4, 32], strides = [1, 1]} : vector<4x128xf32> to vector<4x32xf32>
    %286 = arith.mulf %283, %243 : vector<4x32xf32>
    %287 = arith.mulf %282, %284 : vector<4x32xf32>
    %288 = arith.addf %286, %287 : vector<4x32xf32>
    %289 = math.tanh %288 : vector<4x32xf32>
    %290 = arith.mulf %285, %289 : vector<4x32xf32>
    %cst_105 = arith.constant dense<0.000000e+00> : vector<4x32xf32>
    %291 = tpu.matmul %288, %24, %cst_105 {dimension_numbers = #tpu.dot_dimension_numbers<[1], [0], [0], [1], [0, 0, 1, 1], [], []>} : vector<4x32xf32>, vector<32x32xf32>, vector<4x32xf32> -> vector<4x32xf32>
    %292 = arith.addf %291, %29 : vector<4x32xf32>
    %cst_106 = arith.constant 0.000000e+00 : f32
    %293 = vector.broadcast %cst_106 : f32 to vector<4x32xf32>
    %294 = arith.maximumf %292, %293 : vector<4x32xf32>
    %cst_107 = arith.constant dense<0.000000e+00> : vector<4x32xf32>
    %295 = tpu.matmul %294, %25, %cst_107 {dimension_numbers = #tpu.dot_dimension_numbers<[1], [0], [0], [1], [0, 0, 1, 1], [], []>} : vector<4x32xf32>, vector<32x32xf32>, vector<4x32xf32> -> vector<4x32xf32>
    %296 = arith.addf %295, %32 : vector<4x32xf32>
    %cst_108 = arith.constant 0.000000e+00 : f32
    %297 = vector.broadcast %cst_108 : f32 to vector<4x32xf32>
    %298 = arith.maximumf %296, %297 : vector<4x32xf32>
    %cst_109 = arith.constant dense<0.000000e+00> : vector<4x32xf32>
    %299 = tpu.matmul %298, %26, %cst_109 {dimension_numbers = #tpu.dot_dimension_numbers<[1], [0], [0], [1], [0, 0, 1, 1], [], []>} : vector<4x32xf32>, vector<32x32xf32>, vector<4x32xf32> -> vector<4x32xf32>
    %300 = arith.addf %299, %35 : vector<4x32xf32>
    %301 = math.tanh %300 : vector<4x32xf32>
    %302 = vector.extract_strided_slice %301 {offsets = [0, 0], sizes = [4, 2], strides = [1, 1]} : vector<4x32xf32> to vector<4x2xf32>
    %cst_110 = arith.constant 2.000000e+00 : f32
    %303 = vector.broadcast %cst_110 : f32 to vector<4x2xf32>
    %304 = arith.mulf %302, %303 : vector<4x2xf32>
    %c5 = arith.constant 5 : index
    %c0_111 = arith.constant 0 : index
    %c0_112 = arith.constant 0 : index
    %305 = vector.load %arg3[%c5, %c0_111, %c0_112] : memref<8x4x2xf32, #tpu.memory_space<vmem>>, vector<1x4x2xf32>
    %306 = vector.shape_cast %305 : vector<1x4x2xf32> to vector<4x2xf32>
    %307 = vector.shape_cast %304 : vector<4x2xf32> to vector<1x4x2xf32>
    tpu.vector_store %arg3[%c5, %c0_111, %c0_112], %307 {strides = array<i32>} : memref<8x4x2xf32, #tpu.memory_space<vmem>>, vector<1x4x2xf32>,
    %cst_113 = arith.constant dense<0.000000e+00> : vector<4x32xf32>
    %308 = tpu.matmul %301, %12, %cst_113 {dimension_numbers = #tpu.dot_dimension_numbers<[1], [0], [0], [1], [0, 0, 1, 1], [], []>} : vector<4x32xf32>, vector<32x32xf32>, vector<4x32xf32> -> vector<4x32xf32>
    %309 = arith.addf %308, %17 : vector<4x32xf32>
    %cst_114 = arith.constant 0.000000e+00 : f32
    %310 = vector.broadcast %cst_114 : f32 to vector<4x32xf32>
    %311 = arith.maximumf %309, %310 : vector<4x32xf32>
    %cst_115 = arith.constant dense<0.000000e+00> : vector<4x32xf32>
    %312 = tpu.matmul %311, %13, %cst_115 {dimension_numbers = #tpu.dot_dimension_numbers<[1], [0], [0], [1], [0, 0, 1, 1], [], []>} : vector<4x32xf32>, vector<32x32xf32>, vector<4x32xf32> -> vector<4x32xf32>
    %313 = arith.addf %312, %20 : vector<4x32xf32>
    %cst_116 = arith.constant 0.000000e+00 : f32
    %314 = vector.broadcast %cst_116 : f32 to vector<4x32xf32>
    %315 = arith.maximumf %313, %314 : vector<4x32xf32>
    %cst_117 = arith.constant dense<0.000000e+00> : vector<4x32xf32>
    %316 = tpu.matmul %315, %14, %cst_117 {dimension_numbers = #tpu.dot_dimension_numbers<[1], [0], [0], [1], [0, 0, 1, 1], [], []>} : vector<4x32xf32>, vector<32x32xf32>, vector<4x32xf32> -> vector<4x32xf32>
    %317 = arith.addf %316, %23 : vector<4x32xf32>
    %318 = tpu.concatenate %317, %290 in 1 : vector<4x32xf32>, vector<4x32xf32> -> vector<4x64xf32>
    %cst_118 = arith.constant dense<0.000000e+00> : vector<4x128xf32>
    %319 = tpu.matmul %318, %36, %cst_118 {dimension_numbers = #tpu.dot_dimension_numbers<[1], [0], [0], [1], [0, 0, 1, 1], [], []>} : vector<4x64xf32>, vector<64x128xf32>, vector<4x128xf32> -> vector<4x128xf32>
    %320 = arith.addf %319, %39 : vector<4x128xf32>
    %321 = arith.negf %320 : vector<4x128xf32>
    %322 = math.exp %321 : vector<4x128xf32>
    %cst_119 = arith.constant 1.000000e+00 : f32
    %323 = vector.broadcast %cst_119 : f32 to vector<4x128xf32>
    %324 = arith.addf %323, %322 : vector<4x128xf32>
    %325 = arith.divf %323, %324 : vector<4x128xf32>
    %326 = math.tanh %320 : vector<4x128xf32>
    %327 = vector.extract_strided_slice %325 {offsets = [0, 0], sizes = [4, 32], strides = [1, 1]} : vector<4x128xf32> to vector<4x32xf32>
    %328 = vector.extract_strided_slice %325 {offsets = [0, 32], sizes = [4, 32], strides = [1, 1]} : vector<4x128xf32> to vector<4x32xf32>
    %329 = vector.extract_strided_slice %326 {offsets = [0, 64], sizes = [4, 32], strides = [1, 1]} : vector<4x128xf32> to vector<4x32xf32>
    %330 = vector.extract_strided_slice %325 {offsets = [0, 96], sizes = [4, 32], strides = [1, 1]} : vector<4x128xf32> to vector<4x32xf32>
    %331 = arith.mulf %328, %288 : vector<4x32xf32>
    %332 = arith.mulf %327, %329 : vector<4x32xf32>
    %333 = arith.addf %331, %332 : vector<4x32xf32>
    %334 = math.tanh %333 : vector<4x32xf32>
    %335 = arith.mulf %330, %334 : vector<4x32xf32>
    %cst_120 = arith.constant dense<0.000000e+00> : vector<4x32xf32>
    %336 = tpu.matmul %333, %24, %cst_120 {dimension_numbers = #tpu.dot_dimension_numbers<[1], [0], [0], [1], [0, 0, 1, 1], [], []>} : vector<4x32xf32>, vector<32x32xf32>, vector<4x32xf32> -> vector<4x32xf32>
    %337 = arith.addf %336, %29 : vector<4x32xf32>
    %cst_121 = arith.constant 0.000000e+00 : f32
    %338 = vector.broadcast %cst_121 : f32 to vector<4x32xf32>
    %339 = arith.maximumf %337, %338 : vector<4x32xf32>
    %cst_122 = arith.constant dense<0.000000e+00> : vector<4x32xf32>
    %340 = tpu.matmul %339, %25, %cst_122 {dimension_numbers = #tpu.dot_dimension_numbers<[1], [0], [0], [1], [0, 0, 1, 1], [], []>} : vector<4x32xf32>, vector<32x32xf32>, vector<4x32xf32> -> vector<4x32xf32>
    %341 = arith.addf %340, %32 : vector<4x32xf32>
    %cst_123 = arith.constant 0.000000e+00 : f32
    %342 = vector.broadcast %cst_123 : f32 to vector<4x32xf32>
    %343 = arith.maximumf %341, %342 : vector<4x32xf32>
    %cst_124 = arith.constant dense<0.000000e+00> : vector<4x32xf32>
    %344 = tpu.matmul %343, %26, %cst_124 {dimension_numbers = #tpu.dot_dimension_numbers<[1], [0], [0], [1], [0, 0, 1, 1], [], []>} : vector<4x32xf32>, vector<32x32xf32>, vector<4x32xf32> -> vector<4x32xf32>
    %345 = arith.addf %344, %35 : vector<4x32xf32>
    %346 = math.tanh %345 : vector<4x32xf32>
    %347 = vector.extract_strided_slice %346 {offsets = [0, 0], sizes = [4, 2], strides = [1, 1]} : vector<4x32xf32> to vector<4x2xf32>
    %cst_125 = arith.constant 2.000000e+00 : f32
    %348 = vector.broadcast %cst_125 : f32 to vector<4x2xf32>
    %349 = arith.mulf %347, %348 : vector<4x2xf32>
    %c6 = arith.constant 6 : index
    %c0_126 = arith.constant 0 : index
    %c0_127 = arith.constant 0 : index
    %350 = vector.load %arg3[%c6, %c0_126, %c0_127] : memref<8x4x2xf32, #tpu.memory_space<vmem>>, vector<1x4x2xf32>
    %351 = vector.shape_cast %350 : vector<1x4x2xf32> to vector<4x2xf32>
    %352 = vector.shape_cast %349 : vector<4x2xf32> to vector<1x4x2xf32>
    tpu.vector_store %arg3[%c6, %c0_126, %c0_127], %352 {strides = array<i32>} : memref<8x4x2xf32, #tpu.memory_space<vmem>>, vector<1x4x2xf32>,
    %cst_128 = arith.constant dense<0.000000e+00> : vector<4x32xf32>
    %353 = tpu.matmul %346, %12, %cst_128 {dimension_numbers = #tpu.dot_dimension_numbers<[1], [0], [0], [1], [0, 0, 1, 1], [], []>} : vector<4x32xf32>, vector<32x32xf32>, vector<4x32xf32> -> vector<4x32xf32>
    %354 = arith.addf %353, %17 : vector<4x32xf32>
    %cst_129 = arith.constant 0.000000e+00 : f32
    %355 = vector.broadcast %cst_129 : f32 to vector<4x32xf32>
    %356 = arith.maximumf %354, %355 : vector<4x32xf32>
    %cst_130 = arith.constant dense<0.000000e+00> : vector<4x32xf32>
    %357 = tpu.matmul %356, %13, %cst_130 {dimension_numbers = #tpu.dot_dimension_numbers<[1], [0], [0], [1], [0, 0, 1, 1], [], []>} : vector<4x32xf32>, vector<32x32xf32>, vector<4x32xf32> -> vector<4x32xf32>
    %358 = arith.addf %357, %20 : vector<4x32xf32>
    %cst_131 = arith.constant 0.000000e+00 : f32
    %359 = vector.broadcast %cst_131 : f32 to vector<4x32xf32>
    %360 = arith.maximumf %358, %359 : vector<4x32xf32>
    %cst_132 = arith.constant dense<0.000000e+00> : vector<4x32xf32>
    %361 = tpu.matmul %360, %14, %cst_132 {dimension_numbers = #tpu.dot_dimension_numbers<[1], [0], [0], [1], [0, 0, 1, 1], [], []>} : vector<4x32xf32>, vector<32x32xf32>, vector<4x32xf32> -> vector<4x32xf32>
    %362 = arith.addf %361, %23 : vector<4x32xf32>
    %363 = tpu.concatenate %362, %335 in 1 : vector<4x32xf32>, vector<4x32xf32> -> vector<4x64xf32>
    %cst_133 = arith.constant dense<0.000000e+00> : vector<4x128xf32>
    %364 = tpu.matmul %363, %36, %cst_133 {dimension_numbers = #tpu.dot_dimension_numbers<[1], [0], [0], [1], [0, 0, 1, 1], [], []>} : vector<4x64xf32>, vector<64x128xf32>, vector<4x128xf32> -> vector<4x128xf32>
    %365 = arith.addf %364, %39 : vector<4x128xf32>
    %366 = arith.negf %365 : vector<4x128xf32>
    %367 = math.exp %366 : vector<4x128xf32>
    %cst_134 = arith.constant 1.000000e+00 : f32
    %368 = vector.broadcast %cst_134 : f32 to vector<4x128xf32>
    %369 = arith.addf %368, %367 : vector<4x128xf32>
    %370 = arith.divf %368, %369 : vector<4x128xf32>
    %371 = math.tanh %365 : vector<4x128xf32>
    %372 = vector.extract_strided_slice %370 {offsets = [0, 0], sizes = [4, 32], strides = [1, 1]} : vector<4x128xf32> to vector<4x32xf32>
    %373 = vector.extract_strided_slice %370 {offsets = [0, 32], sizes = [4, 32], strides = [1, 1]} : vector<4x128xf32> to vector<4x32xf32>
    %374 = vector.extract_strided_slice %371 {offsets = [0, 64], sizes = [4, 32], strides = [1, 1]} : vector<4x128xf32> to vector<4x32xf32>
    %375 = arith.mulf %373, %333 : vector<4x32xf32>
    %376 = arith.mulf %372, %374 : vector<4x32xf32>
    %377 = arith.addf %375, %376 : vector<4x32xf32>
    %cst_135 = arith.constant dense<0.000000e+00> : vector<4x32xf32>
    %378 = tpu.matmul %377, %24, %cst_135 {dimension_numbers = #tpu.dot_dimension_numbers<[1], [0], [0], [1], [0, 0, 1, 1], [], []>} : vector<4x32xf32>, vector<32x32xf32>, vector<4x32xf32> -> vector<4x32xf32>
    %379 = arith.addf %378, %29 : vector<4x32xf32>
    %cst_136 = arith.constant 0.000000e+00 : f32
    %380 = vector.broadcast %cst_136 : f32 to vector<4x32xf32>
    %381 = arith.maximumf %379, %380 : vector<4x32xf32>
    %cst_137 = arith.constant dense<0.000000e+00> : vector<4x32xf32>
    %382 = tpu.matmul %381, %25, %cst_137 {dimension_numbers = #tpu.dot_dimension_numbers<[1], [0], [0], [1], [0, 0, 1, 1], [], []>} : vector<4x32xf32>, vector<32x32xf32>, vector<4x32xf32> -> vector<4x32xf32>
    %383 = arith.addf %382, %32 : vector<4x32xf32>
    %cst_138 = arith.constant 0.000000e+00 : f32
    %384 = vector.broadcast %cst_138 : f32 to vector<4x32xf32>
    %385 = arith.maximumf %383, %384 : vector<4x32xf32>
    %cst_139 = arith.constant dense<0.000000e+00> : vector<4x32xf32>
    %386 = tpu.matmul %385, %26, %cst_139 {dimension_numbers = #tpu.dot_dimension_numbers<[1], [0], [0], [1], [0, 0, 1, 1], [], []>} : vector<4x32xf32>, vector<32x32xf32>, vector<4x32xf32> -> vector<4x32xf32>
    %387 = arith.addf %386, %35 : vector<4x32xf32>
    %388 = math.tanh %387 : vector<4x32xf32>
    %389 = vector.extract_strided_slice %388 {offsets = [0, 0], sizes = [4, 2], strides = [1, 1]} : vector<4x32xf32> to vector<4x2xf32>
    %cst_140 = arith.constant 2.000000e+00 : f32
    %390 = vector.broadcast %cst_140 : f32 to vector<4x2xf32>
    %391 = arith.mulf %389, %390 : vector<4x2xf32>
    %c7 = arith.constant 7 : index
    %c0_141 = arith.constant 0 : index
    %c0_142 = arith.constant 0 : index
    %392 = vector.load %arg3[%c7, %c0_141, %c0_142] : memref<8x4x2xf32, #tpu.memory_space<vmem>>, vector<1x4x2xf32>
    %393 = vector.shape_cast %392 : vector<1x4x2xf32> to vector<4x2xf32>
    %394 = vector.shape_cast %391 : vector<4x2xf32> to vector<1x4x2xf32>
    tpu.vector_store %arg3[%c7, %c0_141, %c0_142], %394 {strides = array<i32>} : memref<8x4x2xf32, #tpu.memory_space<vmem>>, vector<1x4x2xf32>,
    return
  }
}

</mosaic_0001>

<bundles_post_ra>
// kernel: rnn_forward.1
= control target key start
LH: loop header
LB: loop body
LE: loop exit
PB: predicated region body
PF: predicated region fallthrough
CT: control target
= control target key end

     0   :  { %vm110_vm0 = vcmask 1043456   ;;  %vm106_vm1 = vcmask 31744   ;;  %v5676_v0 = vmov 0.0   ;;  %vm5677_vm2 = vmmov 0   ;;  %s5678_s27 = smov 64   ;;  %s5679_s30 = smov 96   ;;  %s6945_s1 = inlined_call_operand.vmem [shape: f32[336,32], index: 1, kind: input, shape index: {}]   ;;  %s6946_s0 = inlined_call_operand.vmem [shape: f32[4,4], index: 0, kind: input, shape index: {}]   ;;  %s6947_s2 = inlined_call_operand.vmem [shape: f32[65,128], index: 2, kind: input, shape index: {}]   ;;  %s6948_s3 = inlined_call_operand.vmem [shape: f32[8,4,2], index: 3, kind: output, shape index: {}]  }
   0x1   :  { %4888 = vmatprep.subr.mxu0 %v5676_v0  ;;  %v14_v1 = vld [vmem:[%s6945_s1] sm:$0xf]  ;;  %4890 = vmatprep.mubr.msk.f32.mxu0 %vm5677_vm2, %v5676_v0  ;;  %v17_v4 = vld [vmem:[%s6945_s1 + $0x18] sm:$0xff]  ;;  %v16_v5 = vld [vmem:[%s6945_s1 + $0x10] sm:$0xff]  ;;  %vm185_vm3 = vcmask 261120   ;;  %s5680_s4 = smov 32  }
   0x2   :  { %v105_v2 = vld [vmem:[%s6946_s0] sm:$0xf]  ;;  %4889 = vmatpush3.msk.msra.mxu0 %vm110_vm0, %v14_v1  ;;  %4893 = vmatprep.subr.mxu1 %v5676_v0  ;;  %v15_v6 = vld [vmem:[%s6945_s1 + $0x8] sm:$0xff]  ;;  %v21_v13 = vld [vmem:[%s6945_s1 + $0x38] sm:$0xff]  ;;  %vm647_vm4 = vcmask 11264   ;;  %vm875_vm5 = vcmask 523264  }
   0x3   :  { %v18_v3 = vld [vmem:[%s6945_s1 + $0x20] sm:$0xff]  ;;  %4891 = vmatmul.mubr.msk.f32.vlgmr.msra.gmra.mxu0 %vm106_vm1, %v105_v2  ;;  %4901 = vmatprep.mubr.msk.f32.mxu1 %vm5677_vm2, %v5676_v0  ;;  %v4501_v8 = vld [vmem:[%s6945_s1 + $0x48] ss:$0 sm:$0xff]  ;;  %v20_v14 = vld [vmem:[%s6945_s1 + $0x30] sm:$0xff] }
   0x4   :  { %4894 = vmatpush3.msra.mxu1 %v18_v3  ;;  %4904 = vmatprep.subr.mxu0 %v5676_v0  ;;  %v22_v7 = vld [vmem:[%s6945_s1 + $0x40] sm:$0xff]  ;;  %v19_v15 = vld [vmem:[%s6945_s1 + $0x28] sm:$0xff]  ;;  %v5757_v16 = vld [vmem:[%s6947_s2 + $0x18] sm:$0xff] }
   0x5   :  { %4895 = vmatprep.subr.mxu1 %v5676_v0  ;;  %4912 = vmatprep.mubr.msk.f32.mxu0 %vm5677_vm2, %v5676_v0  ;;  %v5762_v17 = vld [vmem:[%s6947_s2 + $0x10] sm:$0xff]  ;;  %v5777_v23 = vld [vmem:[%s6947_s2 + $0x8] sm:$0xff]  ;;  %v5784_v24 = vld [vmem:[%s6947_s2] sm:$0xff] }
   0x6   :  { %4896 = vmatpush3.msra.mxu1 %v17_v4  ;;  %4905 = vmatpush3.msra.mxu0 %v22_v7  ;;  %v4502_v18 = vld [vmem:[%s6945_s1 + $0x50] ss:$0 sm:$0xff]  ;;  %v4503_v25 = vld [vmem:[%s6945_s1 + $0x58] ss:$0 sm:$0xff]  ;;  %v5802_v30 = vld [vmem:[%s6945_s1 + $0xe8] sm:$0xff] }
   0x7   :  { %4897 = vmatprep.subr.mxu1 %v5676_v0  ;;  %4906 = vmatprep.subr.mxu0 %v5676_v0  ;;  %v5797_v29 = vld [vmem:[%s6945_s1 + $0xf0] sm:$0xff]  ;;  %v5809_v31 = vld [vmem:[%s6945_s1 + $0xe0] sm:$0xff]  ;;  %v5824_v36 = vld [vmem:[%s6945_s1 + $0xd8] sm:$0xff] }
   0x8   :  { %4898 = vmatpush3.msra.mxu1 %v16_v5  ;;  %4907 = vmatpush3.msra.mxu0 %v21_v13  ;;  %v5818_v32 = vld [vmem:[%s6947_s2 + $0x40] ss:$0 sm:$0xff]  ;;  %v5835_v44 = vld [vmem:[%s6945_s1 + $0x110] sm:$0xff]  ;;  %v5844_v46 = vld [vmem:[%s6945_s1 + $0x108] sm:$0xff] }
   0x9   :  { %4899 = vmatprep.subr.mxu1 %v5676_v0  ;;  %4908 = vmatprep.subr.mxu0 %v5676_v0  ;;  %v5851_v47 = vld [vmem:[%s6945_s1 + $0x100] sm:$0xff]  ;;  %v5858_v48 = vld [vmem:[%s6945_s1 + $0xf8] sm:$0xff]  ;;  %v5865_v49 = vld [vmem:[%s6945_s1 + $0x130] sm:$0xff] }
   0xa   :  { %4900 = vmatpush3.msra.mxu1 %v15_v6  ;;  %4909 = vmatpush3.msra.mxu0 %v20_v14  ;;  %v5873_v52 = vld [vmem:[%s6945_s1 + $0x138] ss:$0 sm:$0xff]  ;;  %v5882_v57 = vld [vmem:[%s6945_s1 + $0x128] sm:$0xff]  ;;  %v5889_v58 = vld [vmem:[%s6945_s1 + $0x120] sm:$0xff] }
   0xb   :  { %4915 = vmatprep.subr.mxu1 %v5676_v0  ;;  %4910 = vmatprep.subr.mxu0 %v5676_v0  ;;  %v5896_v59 = vld [vmem:[%s6945_s1 + $0x118] sm:$0xff]  ;;  %v5903_v60 = vld [vmem:[%s6945_s1 + $0x140] ss:$0 sm:$0xff]  ;;  %v5919_v3 = vld [vmem:[%s6945_s1 + $0x70] sm:$0xff] }
   0xc   :  { %4911 = vmatpush3.msra.mxu0 %v19_v15  ;;  %v5912_v2 = vld [vmem:[%s6945_s1 + $0x78] sm:$0xff]  ;;  %v5926_v4 = vld [vmem:[%s6945_s1 + $0x68] sm:$0xff]  ;;  %v5933_v5 = vld [vmem:[%s6945_s1 + $0x60] sm:$0xff] }
   0xd   :  { %4926 = vmatprep.subr.mxu0 %v5676_v0  ;;  %v5940_v6 = vld [vmem:[%s6945_s1 + $0x98] sm:$0xff]  ;;  %v5947_v7 = vld [vmem:[%s6945_s1 + $0x148] ss:$0 sm:$0xff]  ;;  %v5960_v13 = vld [vmem:[%s6945_s1 + $0x90] sm:$0xff] }
   0xe   :  { %v5967_v14 = vld [vmem:[%s6945_s1 + $0x88] sm:$0xff]  ;;  %v5974_v15 = vld [vmem:[%s6945_s1 + $0x80] sm:$0xff] }
  0xc3   :  { %v180_v9 = vpop.f32.mrf.mxu0 }
  0xc4   :  { %v181_v10 = vadd.f32 %v4501_v8, %v180_v9 }
  0xc5   :  { %v4892_v11 = vpop.f32.mrf.mxu0 }
  0xc6   :  { %v184_v12 = vmax.f32 %v181_v10, 0.0 }
  0xc8   :  { %4902 = vmatmul.mubr.msk.f32.vlgmr.msra.gmra.mxu1 %vm185_vm3, %v184_v12 }
  0xc9   :  { %4923 = vmatprep.mubr.msk.f32.mxu1 %vm5677_vm2, %v5676_v0  ;;  %4916 = vmatpush3.msra.mxu1 %v5757_v16 }
  0xca   :  { %4917 = vmatprep.subr.mxu1 %v5676_v0 }
  0xcb   :  { %4918 = vmatpush3.msra.mxu1 %v5762_v17 }
  0xcc   :  { %4919 = vmatprep.subr.mxu1 %v5676_v0 }
  0xcd   :  { %4920 = vmatpush3.msra.mxu1 %v5777_v23 }
  0xce   :  { %4921 = vmatprep.subr.mxu1 %v5676_v0 }
  0xcf   :  { %4922 = vmatpush3.msra.mxu1 %v5784_v24 }
  0xd0   :  { %4937 = vmatprep.subr.mxu1 %v5676_v0 }
 0x188   :  { %v255_v19 = vpop.f32.mrf.mxu1 }
 0x189   :  { %v256_v20 = vadd.f32 %v4502_v18, %v255_v19  ;;  %v5980_v18 = vld [vmem:[%s6945_s1 + $0xb8] sm:$0xff]  ;;  %v5988_v19 = vld [vmem:[%s6945_s1 + $0xc0] ss:$0 sm:$0xff] }
 0x18a   :  { %v4903_v21 = vpop.f32.mrf.mxu1 }
 0x18b   :  { %v259_v22 = vmax.f32 %v256_v20, 0.0 }
 0x18d   :  { %4913 = vmatmul.mubr.msk.f32.vlgmr.msra.gmra.mxu0 %vm185_vm3, %v259_v22 }
 0x18e   :  { %4934 = vmatprep.mubr.msk.f32.mxu0 %vm5677_vm2, %v5676_v0  ;;  %4927 = vmatpush3.msra.mxu0 %v5797_v29 }
 0x18f   :  { %4928 = vmatprep.subr.mxu0 %v5676_v0 }
 0x190   :  { %4929 = vmatpush3.msra.mxu0 %v5802_v30 }
 0x191   :  { %4930 = vmatprep.subr.mxu0 %v5676_v0 }
 0x192   :  { %4931 = vmatpush3.msra.mxu0 %v5809_v31 }
 0x193   :  { %4932 = vmatprep.subr.mxu0 %v5676_v0 }
 0x194   :  { %4933 = vmatpush3.msra.mxu0 %v5824_v36 }
 0x195   :  { %4948 = vmatprep.subr.mxu0 %v5676_v0 }
 0x24d   :  { %v329_v26 = vpop.f32.mrf.mxu0 }
 0x24e   :  { %v330_v27 = vadd.f32 %v4503_v25, %v329_v26  ;;  %v5997_v26 = vld [vmem:[%s6945_s1 + $0xb0] sm:$0xff] }
 0x24f   :  { %v4914_v28 = vpop.f32.mrf.mxu0 }
 0x250   :  { %4924 = vmatmul.mubr.msk.f32.vlgmr.msra.gmra.mxu1 %vm185_vm3, %v330_v27  ;;  %v6004_v27 = vld [vmem:[%s6945_s1 + $0xa8] sm:$0xff]  ;;  %v6011_v28 = vld [vmem:[%s6945_s1 + $0xa0] sm:$0xff] }
 0x251   :  { %4945 = vmatprep.mubr.msk.f32.mxu1 %vm5677_vm2, %v5676_v0  ;;  %4938 = vmatpush3.msra.mxu1 %v5835_v44 }
 0x252   :  { %4939 = vmatprep.subr.mxu1 %v5676_v0 }
 0x253   :  { %4940 = vmatpush3.msra.mxu1 %v5844_v46 }
 0x254   :  { %4941 = vmatprep.subr.mxu1 %v5676_v0 }
 0x255   :  { %4942 = vmatpush3.msra.mxu1 %v5851_v47 }
 0x256   :  { %4943 = vmatprep.subr.mxu1 %v5676_v0 }
 0x257   :  { %4944 = vmatpush3.msra.mxu1 %v5858_v48 }
 0x258   :  { %4959 = vmatprep.subr.mxu1 %v5676_v0 }
 0x310   :  { %v402_v33 = vpop.f32.mrf.mxu1 }
 0x311   :  { %v403_v34 = vadd.f32 %v5818_v32, %v402_v33  ;;  %v6017_v33 = vld [vmem:[%s6947_s2 + $0x38] sm:$0xff] }
 0x312   :  { %v4925_v35 = vpop.f32.mrf.mxu1 }
 0x313   :  { %5559 = vtanh.f32 %v403_v34  ;;  %v4516_v38 = vmul.f32 -1.442695, %v403_v34  ;;  %v6022_v34 = vld [vmem:[%s6947_s2 + $0x30] sm:$0xff]  ;;  %v6030_v35 = vld [vmem:[%s6947_s2 + $0x28] sm:$0xff] }
 0x315   :  { %5561 = vpow2.f32 %v4516_v38  ;;  %v6054_v38 = vld [vmem:[%s6945_s1 + $0xc8] ss:$0 sm:$0xff] }
 0x320   :  { %v5560_v37 = vpop.eup %5559 }
 0x321   :  { %414 = vrot.lane.b32.xlu0 %v5560_v37, %s5678_s27  ;;  %v6037_v37 = vld [vmem:[%s6947_s2 + $0x20] sm:$0xff] }
 0x322   :  { %v5562_v39 = vpop.eup %5561 }
 0x323   :  { %v409_v40 = vadd.f32 1.0, %v5562_v39 }
 0x325   :  { %5563 = vrcp.f32 %v409_v40 }
 0x332   :  { %v5564_v41 = vpop.eup %5563 }
 0x393   :  { %v415_v42 = vpop.permute.xlu0 %414 }
 0x394   :  { %v417_v43 = vmul.f32 %v5564_v41, %v415_v42 }
 0x396   :  { %5565 = vtanh.f32 %v417_v43  ;;  %4935 = vmatmul.mubr.msk.f32.vlgmr.msra.gmra.mxu0 %vm185_vm3, %v417_v43 }
 0x397   :  { %4956 = vmatprep.mubr.msk.f32.mxu0 %vm5677_vm2, %v5676_v0  ;;  %4949 = vmatpush3.msra.mxu0 %v5865_v49 }
 0x398   :  { %4950 = vmatprep.subr.mxu0 %v5676_v0 }
 0x399   :  { %4951 = vmatpush3.msra.mxu0 %v5882_v57 }
 0x39a   :  { %4952 = vmatprep.subr.mxu0 %v5676_v0 }
 0x39b   :  { %4953 = vmatpush3.msra.mxu0 %v5889_v58 }
 0x39c   :  { %4954 = vmatprep.subr.mxu0 %v5676_v0 }
 0x39d   :  { %4955 = vmatpush3.msra.mxu0 %v5896_v59 }
 0x39e   :  { %4970 = vmatprep.subr.mxu0 %v5676_v0 }
 0x3a3   :  { %v5566_v45 = vpop.eup %5565 }
 0x3a4   :  { %420 = vrot.lane.b32.xlu0 %v5566_v45, %s5679_s30 }
 0x3a8   :  { %956 = vrot.lane.b32.xlu0 %v417_v43, %s5680_s4  ;;  %v6071_v43 = vld [vmem:[%s6945_s1 + $0xd0] ss:$0 sm:$0xff] }
 0x416   :  { %v421_v50 = vpop.permute.xlu0 %420 }
 0x417   :  { %v423_v51 = vmul.f32 %v5564_v41, %v421_v50 }
 0x419   :  { %871 = vrot.lane.b32.xlu1 %v423_v51, %s5678_s27 }
 0x456   :  { %v493_v53 = vpop.f32.mrf.mxu0 }
 0x457   :  { %v494_v54 = vadd.f32 %v5873_v52, %v493_v53 }
 0x458   :  { %v4936_v55 = vpop.f32.mrf.mxu0 }
 0x459   :  { %v497_v56 = vmax.f32 %v494_v54, 0.0 }
 0x45b   :  { %4946 = vmatmul.mubr.msk.f32.vlgmr.msra.gmra.mxu1 %vm185_vm3, %v497_v56 }
 0x45c   :  { %4967 = vmatprep.mubr.msk.f32.mxu1 %vm5677_vm2, %v5676_v0  ;;  %4960 = vmatpush3.msra.mxu1 %v5912_v2 }
 0x45d   :  { %4961 = vmatprep.subr.mxu1 %v5676_v0 }
 0x45e   :  { %4962 = vmatpush3.msra.mxu1 %v5919_v3 }
 0x45f   :  { %4963 = vmatprep.subr.mxu1 %v5676_v0 }
 0x460   :  { %4964 = vmatpush3.msra.mxu1 %v5926_v4 }
 0x461   :  { %4965 = vmatprep.subr.mxu1 %v5676_v0 }
 0x462   :  { %4966 = vmatpush3.msra.mxu1 %v5933_v5 }
 0x463   :  { %4981 = vmatprep.subr.mxu1 %v5676_v0 }
 0x48b   :  { %v872_v51 = vpop.permute.xlu1 %871 }
 0x51b   :  { %v567_v61 = vpop.f32.mrf.mxu1 }
 0x51c   :  { %v568_v62 = vadd.f32 %v5903_v60, %v567_v61 }
 0x51d   :  { %v4947_v63 = vpop.f32.mrf.mxu1 }
 0x51e   :  { %v571_v1 = vmax.f32 %v568_v62, 0.0 }
 0x520   :  { %4957 = vmatmul.mubr.msk.f32.vlgmr.msra.gmra.mxu0 %vm185_vm3, %v571_v1 }
 0x521   :  { %4978 = vmatprep.mubr.msk.f32.mxu0 %vm5677_vm2, %v5676_v0  ;;  %4971 = vmatpush3.msra.mxu0 %v5940_v6 }
 0x522   :  { %4972 = vmatprep.subr.mxu0 %v5676_v0 }
 0x523   :  { %4973 = vmatpush3.msra.mxu0 %v5960_v13 }
 0x524   :  { %4974 = vmatprep.subr.mxu0 %v5676_v0 }
 0x525   :  { %4975 = vmatpush3.msra.mxu0 %v5967_v14 }
 0x526   :  { %4976 = vmatprep.subr.mxu0 %v5676_v0 }
 0x527   :  { %4977 = vmatpush3.msra.mxu0 %v5974_v15 }
 0x528   :  { %4992 = vmatprep.subr.mxu0 %v5676_v0 }
 0x5e0   :  { %v641_v8 = vpop.f32.mrf.mxu0 }
 0x5e1   :  { %v642_v9 = vadd.f32 %v5947_v7, %v641_v8 }
 0x5e2   :  { %v4958_v10 = vpop.f32.mrf.mxu0 }
 0x5e3   :  { %5567 = vtanh.f32 %v642_v9 }
 0x5f0   :  { %v5568_v11 = vpop.eup %5567 }
 0x5f1   :  { %v646_v12 = vmul.f32 2.0, %v5568_v11  ;;  %4968 = vmatmul.mubr.msk.f32.vlgmr.msra.gmra.mxu1 %vm185_vm3, %v5568_v11 }
 0x5f2   :  { %4989 = vmatprep.mubr.msk.f32.mxu1 %vm5677_vm2, %v5676_v0  ;;  %4982 = vmatpush3.msra.mxu1 %v5980_v18 }
 0x5f3   :  { %648 = vst.msk [vmem:[%s6948_s3] sm:$0xf] %vm647_vm4, %v646_v12  ;;  %4983 = vmatprep.subr.mxu1 %v5676_v0  ;;  %v957_v12 = vpop.permute.xlu0 %956 }
 0x5f4   :  { %4984 = vmatpush3.msra.mxu1 %v5997_v26 }
 0x5f5   :  { %4985 = vmatprep.subr.mxu1 %v5676_v0 }
 0x5f6   :  { %4986 = vmatpush3.msra.mxu1 %v6004_v27 }
 0x5f7   :  { %4987 = vmatprep.subr.mxu1 %v5676_v0 }
 0x5f8   :  { %4988 = vmatpush3.msra.mxu1 %v6011_v28 }
 0x5f9   :  { %5011 = vmatprep.subr.mxu1 %v5676_v0 }
 0x6b1   :  { %v718_v20 = vpop.f32.mrf.mxu1 }
 0x6b2   :  { %v719_v21 = vadd.f32 %v5988_v19, %v718_v20 }
 0x6b3   :  { %v4969_v22 = vpop.f32.mrf.mxu1 }
 0x6b4   :  { %v722_v25 = vmax.f32 %v719_v21, 0.0 }
 0x6b6   :  { %4979 = vmatmul.mubr.msk.f32.vlgmr.msra.gmra.mxu0 %vm185_vm3, %v722_v25 }
 0x6b7   :  { %5008 = vmatprep.mubr.msk.f32.mxu0 %vm5677_vm2, %v5676_v0  ;;  %4993 = vmatpush3.msra.mxu0 %v6017_v33 }
 0x6b8   :  { %4994 = vmatprep.subr.mxu0 %v5676_v0 }
 0x6b9   :  { %4995 = vmatpush3.msra.mxu0 %v6022_v34 }
 0x6ba   :  { %4996 = vmatprep.subr.mxu0 %v5676_v0 }
 0x6bb   :  { %4997 = vmatpush3.msra.mxu0 %v6030_v35 }
 0x6bc   :  { %4998 = vmatprep.subr.mxu0 %v5676_v0 }
 0x6bd   :  { %4999 = vmatpush3.msra.mxu0 %v6037_v37 }
 0x6be   :  { %5000 = vmatprep.subr.mxu0 %v5676_v0 }
 0x6bf   :  { %5001 = vmatpush3.msra.mxu0 %v5757_v16 }
 0x6c0   :  { %5002 = vmatprep.subr.mxu0 %v5676_v0 }
 0x6c1   :  { %5003 = vmatpush3.msra.mxu0 %v5762_v17 }
 0x6c2   :  { %5004 = vmatprep.subr.mxu0 %v5676_v0 }
 0x6c3   :  { %5005 = vmatpush3.msra.mxu0 %v5777_v23 }
 0x6c4   :  { %5006 = vmatprep.subr.mxu0 %v5676_v0 }
 0x6c5   :  { %5007 = vmatpush3.msra.mxu0 %v5784_v24 }
 0x6c6   :  { %5033 = vmatprep.subr.mxu0 %v5676_v0 }
 0x776   :  { %v792_v39 = vpop.f32.mrf.mxu0 }
 0x777   :  { %v793_v40 = vadd.f32 %v6054_v38, %v792_v39 }
 0x778   :  { %v4980_v41 = vpop.f32.mrf.mxu0 }
 0x779   :  { %v796_v42 = vmax.f32 %v793_v40, 0.0 }
 0x77b   :  { %4990 = vmatmul.mubr.msk.f32.vlgmr.msra.gmra.mxu1 %vm185_vm3, %v796_v42 }
 0x77c   :  { %5012 = vmatpush3.msra.mxu1 %v5797_v29  ;;  %5019 = vmatprep.mubr.msk.f32.mxu1 %vm5677_vm2, %v5676_v0 }
 0x77d   :  { %5013 = vmatprep.subr.mxu1 %v5676_v0 }
 0x77e   :  { %5014 = vmatpush3.msra.mxu1 %v5802_v30 }
 0x77f   :  { %5015 = vmatprep.subr.mxu1 %v5676_v0 }
 0x780   :  { %5016 = vmatpush3.msra.mxu1 %v5809_v31 }
 0x781   :  { %5017 = vmatprep.subr.mxu1 %v5676_v0 }
 0x782   :  { %5018 = vmatpush3.msra.mxu1 %v5824_v36 }
 0x783   :  { %5022 = vmatprep.subr.mxu1 %v5676_v0 }
 0x83b   :  { %v866_v45 = vpop.f32.mrf.mxu1 }
 0x83c   :  { %v867_v50 = vadd.f32 %v6071_v43, %v866_v45 }
 0x83d   :  { %v4991_v53 = vpop.f32.mrf.mxu1 }
 0x83e   :  { %v874_v54 = vsel %vm185_vm3, %v867_v50, %v872_v51 }
 0x83f   :  { %5009 = vmatmul.mubr.msk.f32.vlgmr.msra.gmra.mxu0 %vm875_vm5, %v874_v54 }
 0x840   :  { %5034 = vmatpush3.msra.mxu0 %v5865_v49  ;;  %5041 = vmatprep.mubr.msk.f32.mxu0 %vm5677_vm2, %v5676_v0 }
 0x841   :  { %5035 = vmatprep.subr.mxu0 %v5676_v0 }
 0x842   :  { %5036 = vmatpush3.msra.mxu0 %v5882_v57 }
 0x843   :  { %5037 = vmatprep.subr.mxu0 %v5676_v0 }
 0x844   :  { %5038 = vmatpush3.msra.mxu0 %v5889_v58 }
 0x845   :  { %5039 = vmatprep.subr.mxu0 %v5676_v0 }
 0x846   :  { %5040 = vmatpush3.msra.mxu0 %v5896_v59 }
 0x847   :  { %5055 = vmatprep.subr.mxu0 %v5676_v0 }
 0x8ff   :  { %v945_v55 = vpop.f32.mrf.mxu0 }
 0x900   :  { %v946_v56 = vadd.f32 %v5818_v32, %v945_v55 }
 0x901   :  { %v5010_v61 = vpop.f32.mrf.mxu0 }
 0x902   :  { %5569 = vtanh.f32 %v946_v56  ;;  %v4524_v63 = vmul.f32 -1.442695, %v946_v56 }
 0x904   :  { %5571 = vpow2.f32 %v4524_v63 }
 0x90f   :  { %v5570_v62 = vpop.eup %5569 }
 0x910   :  { %961 = vrot.lane.b32.xlu1 %v5570_v62, %s5678_s27 }
 0x911   :  { %v5572_v1 = vpop.eup %5571 }
 0x912   :  { %v952_v8 = vadd.f32 1.0, %v5572_v1 }
 0x914   :  { %5573 = vrcp.f32 %v952_v8 }
 0x921   :  { %v5574_v9 = vpop.eup %5573 }
 0x922   :  { %v959_v20 = vmul.f32 %v5574_v9, %v957_v12 }
 0x982   :  { %v962_v10 = vpop.permute.xlu1 %961 }
 0x983   :  { %v964_v11 = vmul.f32 %v5574_v9, %v962_v10 }
 0x985   :  { %966 = vrot.lane.b32.xlu1 %v964_v11, %s5680_s4 }
 0x9f7   :  { %v967_v21 = vpop.permute.xlu1 %966 }
 0x9f8   :  { %v6089_v22 = vadd.f32 %v967_v21, %v959_v20 }
 0x9fa   :  { %5575 = vtanh.f32 %v6089_v22  ;;  %977 = vrot.lane.b32.xlu0 %v6089_v22, %s5679_s30 }
 0xa07   :  { %v5576_v25 = vpop.eup %5575 }
 0xa08   :  { %972 = vrot.lane.b32.xlu1 %v5576_v25, %s5678_s27 }
 0xa6c   :  { %v978_v39 = vpop.permute.xlu0 %977 }
 0xa6d   :  { %5020 = vmatmul.mubr.msk.f32.vlgmr.msra.gmra.mxu1 %vm185_vm3, %v978_v39 }
 0xa6e   :  { %5023 = vmatpush3.msra.mxu1 %v5835_v44  ;;  %5030 = vmatprep.mubr.msk.f32.mxu1 %vm5677_vm2, %v5676_v0 }
 0xa6f   :  { %5024 = vmatprep.subr.mxu1 %v5676_v0 }
 0xa70   :  { %5025 = vmatpush3.msra.mxu1 %v5844_v46 }
 0xa71   :  { %5026 = vmatprep.subr.mxu1 %v5676_v0 }
 0xa72   :  { %5027 = vmatpush3.msra.mxu1 %v5851_v47 }
 0xa73   :  { %5028 = vmatprep.subr.mxu1 %v5676_v0 }
 0xa74   :  { %5029 = vmatpush3.msra.mxu1 %v5858_v48 }
 0xa75   :  { %5044 = vmatprep.subr.mxu1 %v5676_v0 }
 0xa7a   :  { %v973_v40 = vpop.permute.xlu1 %972 }
 0xa7b   :  { %v975_v41 = vmul.f32 %v5574_v9, %v973_v40 }
 0xa7d   :  { %1425 = vrot.lane.b32.xlu0 %v975_v41, %s5678_s27 }
 0xb2d   :  { %v1047_v42 = vpop.f32.mrf.mxu1 }
 0xb2e   :  { %v1048_v45 = vadd.f32 %v5873_v52, %v1047_v42  ;;  %v1426_v42 = vpop.permute.xlu0 %1425 }
 0xb2f   :  { %v5021_v50 = vpop.f32.mrf.mxu1 }
 0xb30   :  { %v1051_v51 = vmax.f32 %v1048_v45, 0.0 }
 0xb32   :  { %5031 = vmatmul.mubr.msk.f32.vlgmr.msra.gmra.mxu1 %vm185_vm3, %v1051_v51 }
 0xb33   :  { %5045 = vmatpush3.msra.mxu1 %v5912_v2  ;;  %5052 = vmatprep.mubr.msk.f32.mxu1 %vm5677_vm2, %v5676_v0 }
 0xb34   :  { %5046 = vmatprep.subr.mxu1 %v5676_v0 }
 0xb35   :  { %5047 = vmatpush3.msra.mxu1 %v5919_v3 }
 0xb36   :  { %5048 = vmatprep.subr.mxu1 %v5676_v0 }
 0xb37   :  { %5049 = vmatpush3.msra.mxu1 %v5926_v4 }
 0xb38   :  { %5050 = vmatprep.subr.mxu1 %v5676_v0 }
 0xb39   :  { %5051 = vmatpush3.msra.mxu1 %v5933_v5 }
 0xb3a   :  { %5066 = vmatprep.subr.mxu1 %v5676_v0 }
 0xbf2   :  { %v1121_v53 = vpop.f32.mrf.mxu1 }
 0xbf3   :  { %v1122_v54 = vadd.f32 %v5903_v60, %v1121_v53 }
 0xbf4   :  { %v5032_v55 = vpop.f32.mrf.mxu1 }
 0xbf5   :  { %v1125_v56 = vmax.f32 %v1122_v54, 0.0 }
 0xbf7   :  { %5042 = vmatmul.mubr.msk.f32.vlgmr.msra.gmra.mxu0 %vm185_vm3, %v1125_v56 }
 0xbf8   :  { %5056 = vmatpush3.msra.mxu0 %v5940_v6  ;;  %5063 = vmatprep.mubr.msk.f32.mxu0 %vm5677_vm2, %v5676_v0 }
 0xbf9   :  { %5057 = vmatprep.subr.mxu0 %v5676_v0 }
 0xbfa   :  { %5058 = vmatpush3.msra.mxu0 %v5960_v13 }
 0xbfb   :  { %5059 = vmatprep.subr.mxu0 %v5676_v0 }
 0xbfc   :  { %5060 = vmatpush3.msra.mxu0 %v5967_v14 }
 0xbfd   :  { %5061 = vmatprep.subr.mxu0 %v5676_v0 }
 0xbfe   :  { %5062 = vmatpush3.msra.mxu0 %v5974_v15 }
 0xbff   :  { %5077 = vmatprep.subr.mxu0 %v5676_v0 }
 0xcb7   :  { %v1195_v61 = vpop.f32.mrf.mxu0 }
 0xcb8   :  { %v1196_v62 = vadd.f32 %v5947_v7, %v1195_v61 }
 0xcb9   :  { %v5043_v63 = vpop.f32.mrf.mxu0 }
 0xcba   :  { %5577 = vtanh.f32 %v1196_v62 }
 0xcc7   :  { %v5578_v1 = vpop.eup %5577 }
 0xcc8   :  { %v1200_v8 = vmul.f32 2.0, %v5578_v1  ;;  %5053 = vmatmul.mubr.msk.f32.vlgmr.msra.gmra.mxu1 %vm185_vm3, %v5578_v1 }
 0xcc9   :  { %5067 = vmatpush3.msra.mxu1 %v5980_v18  ;;  %5074 = vmatprep.mubr.msk.f32.mxu1 %vm5677_vm2, %v5676_v0 }
 0xcca   :  { %4528 = vst.msk [vmem:[%s6948_s3 + $0x4] sm:$0xf] %vm647_vm4, %v1200_v8  ;;  %5068 = vmatprep.subr.mxu1 %v5676_v0 }
 0xccb   :  { %5069 = vmatpush3.msra.mxu1 %v5997_v26 }
 0xccc   :  { %5070 = vmatprep.subr.mxu1 %v5676_v0 }
 0xccd   :  { %5071 = vmatpush3.msra.mxu1 %v6004_v27 }
 0xcce   :  { %5072 = vmatprep.subr.mxu1 %v5676_v0 }
 0xccf   :  { %5073 = vmatpush3.msra.mxu1 %v6011_v28 }
 0xcd0   :  { %5096 = vmatprep.subr.mxu1 %v5676_v0 }
 0xd88   :  { %v1272_v9 = vpop.f32.mrf.mxu1 }
 0xd89   :  { %v1273_v10 = vadd.f32 %v5988_v19, %v1272_v9 }
 0xd8a   :  { %v5054_v11 = vpop.f32.mrf.mxu1 }
 0xd8b   :  { %v1276_v12 = vmax.f32 %v1273_v10, 0.0 }
 0xd8d   :  { %5064 = vmatmul.mubr.msk.f32.vlgmr.msra.gmra.mxu0 %vm185_vm3, %v1276_v12 }
 0xd8e   :  { %5078 = vmatpush3.msra.mxu0 %v6017_v33  ;;  %5093 = vmatprep.mubr.msk.f32.mxu0 %vm5677_vm2, %v5676_v0 }
 0xd8f   :  { %5079 = vmatprep.subr.mxu0 %v5676_v0 }
 0xd90   :  { %5080 = vmatpush3.msra.mxu0 %v6022_v34 }
 0xd91   :  { %5081 = vmatprep.subr.mxu0 %v5676_v0 }
 0xd92   :  { %5082 = vmatpush3.msra.mxu0 %v6030_v35 }
 0xd93   :  { %5083 = vmatprep.subr.mxu0 %v5676_v0 }
 0xd94   :  { %5084 = vmatpush3.msra.mxu0 %v6037_v37 }
 0xd95   :  { %5085 = vmatprep.subr.mxu0 %v5676_v0 }
 0xd96   :  { %5086 = vmatpush3.msra.mxu0 %v5757_v16 }
 0xd97   :  { %5087 = vmatprep.subr.mxu0 %v5676_v0 }
 0xd98   :  { %5088 = vmatpush3.msra.mxu0 %v5762_v17 }
 0xd99   :  { %5089 = vmatprep.subr.mxu0 %v5676_v0 }
 0xd9a   :  { %5090 = vmatpush3.msra.mxu0 %v5777_v23 }
 0xd9b   :  { %5091 = vmatprep.subr.mxu0 %v5676_v0 }
 0xd9c   :  { %5092 = vmatpush3.msra.mxu0 %v5784_v24 }
 0xd9d   :  { %5118 = vmatprep.subr.mxu0 %v5676_v0 }
 0xe4d   :  { %v1346_v20 = vpop.f32.mrf.mxu0 }
 0xe4e   :  { %v1347_v21 = vadd.f32 %v6054_v38, %v1346_v20 }
 0xe4f   :  { %v5065_v25 = vpop.f32.mrf.mxu0 }
 0xe50   :  { %v1350_v39 = vmax.f32 %v1347_v21, 0.0 }
 0xe52   :  { %5075 = vmatmul.mubr.msk.f32.vlgmr.msra.gmra.mxu1 %vm185_vm3, %v1350_v39 }
 0xe53   :  { %5097 = vmatpush3.msra.mxu1 %v5797_v29  ;;  %5104 = vmatprep.mubr.msk.f32.mxu1 %vm5677_vm2, %v5676_v0 }
 0xe54   :  { %5098 = vmatprep.subr.mxu1 %v5676_v0 }
 0xe55   :  { %5099 = vmatpush3.msra.mxu1 %v5802_v30 }
 0xe56   :  { %5100 = vmatprep.subr.mxu1 %v5676_v0 }
 0xe57   :  { %5101 = vmatpush3.msra.mxu1 %v5809_v31 }
 0xe58   :  { %5102 = vmatprep.subr.mxu1 %v5676_v0 }
 0xe59   :  { %5103 = vmatpush3.msra.mxu1 %v5824_v36 }
 0xe5a   :  { %5107 = vmatprep.subr.mxu1 %v5676_v0 }
 0xf12   :  { %v1420_v40 = vpop.f32.mrf.mxu1 }
 0xf13   :  { %v1421_v41 = vadd.f32 %v6071_v43, %v1420_v40 }
 0xf14   :  { %v5076_v45 = vpop.f32.mrf.mxu1 }
 0xf15   :  { %v1428_v50 = vsel %vm185_vm3, %v1421_v41, %v1426_v42 }
 0xf16   :  { %5094 = vmatmul.mubr.msk.f32.vlgmr.msra.gmra.mxu0 %vm875_vm5, %v1428_v50 }
 0xf17   :  { %5119 = vmatpush3.msra.mxu0 %v5865_v49  ;;  %5126 = vmatprep.mubr.msk.f32.mxu0 %vm5677_vm2, %v5676_v0 }
 0xf18   :  { %5120 = vmatprep.subr.mxu0 %v5676_v0 }
 0xf19   :  { %5121 = vmatpush3.msra.mxu0 %v5882_v57 }
 0xf1a   :  { %5122 = vmatprep.subr.mxu0 %v5676_v0 }
 0xf1b   :  { %5123 = vmatpush3.msra.mxu0 %v5889_v58 }
 0xf1c   :  { %5124 = vmatprep.subr.mxu0 %v5676_v0 }
 0xf1d   :  { %5125 = vmatpush3.msra.mxu0 %v5896_v59 }
 0xf1e   :  { %5140 = vmatprep.subr.mxu0 %v5676_v0 }
 0xfd6   :  { %v1498_v51 = vpop.f32.mrf.mxu0 }
 0xfd7   :  { %v1499_v53 = vadd.f32 %v5818_v32, %v1498_v51 }
 0xfd8   :  { %v5095_v54 = vpop.f32.mrf.mxu0 }
 0xfd9   :  { %5579 = vtanh.f32 %v1499_v53  ;;  %v4533_v56 = vmul.f32 -1.442695, %v1499_v53 }
 0xfdb   :  { %5581 = vpow2.f32 %v4533_v56 }
 0xfe6   :  { %v5580_v55 = vpop.eup %5579 }
 0xfe7   :  { %1511 = vrot.lane.b32.xlu1 %v5580_v55, %s5678_s27 }
 0xfe8   :  { %v5582_v61 = vpop.eup %5581 }
 0xfe9   :  { %v1505_v62 = vadd.f32 1.0, %v5582_v61 }
 0xfeb   :  { %5583 = vrcp.f32 %v1505_v62 }
 0xff8   :  { %v5584_v63 = vpop.eup %5583 }
 0xff9   :  { %v1509_v9 = vmul.f32 %v5584_v63, %v6089_v22 }
0x1059   :  { %v1512_v1 = vpop.permute.xlu1 %1511 }
0x105a   :  { %v1514_v8 = vmul.f32 %v5584_v63, %v1512_v1 }
0x105c   :  { %1516 = vrot.lane.b32.xlu0 %v1514_v8, %s5680_s4 }
0x10ce   :  { %v1517_v10 = vpop.permute.xlu0 %1516 }
0x10cf   :  { %v6196_v11 = vadd.f32 %v1517_v10, %v1509_v9 }
0x10d1   :  { %5585 = vtanh.f32 %v6196_v11  ;;  %1527 = vrot.lane.b32.xlu1 %v6196_v11, %s5679_s30 }
0x10de   :  { %v5586_v12 = vpop.eup %5585 }
0x10df   :  { %1522 = vrot.lane.b32.xlu0 %v5586_v12, %s5678_s27 }
0x1143   :  { %v1528_v20 = vpop.permute.xlu1 %1527 }
0x1144   :  { %5105 = vmatmul.mubr.msk.f32.vlgmr.msra.gmra.mxu1 %vm185_vm3, %v1528_v20 }
0x1145   :  { %5108 = vmatpush3.msra.mxu1 %v5835_v44  ;;  %5115 = vmatprep.mubr.msk.f32.mxu1 %vm5677_vm2, %v5676_v0 }
0x1146   :  { %5109 = vmatprep.subr.mxu1 %v5676_v0 }
0x1147   :  { %5110 = vmatpush3.msra.mxu1 %v5844_v46 }
0x1148   :  { %5111 = vmatprep.subr.mxu1 %v5676_v0 }
0x1149   :  { %5112 = vmatpush3.msra.mxu1 %v5851_v47 }
0x114a   :  { %5113 = vmatprep.subr.mxu1 %v5676_v0 }
0x114b   :  { %5114 = vmatpush3.msra.mxu1 %v5858_v48 }
0x114c   :  { %5129 = vmatprep.subr.mxu1 %v5676_v0 }
0x1151   :  { %v1523_v22 = vpop.permute.xlu0 %1522 }
0x1152   :  { %v1525_v21 = vmul.f32 %v5584_v63, %v1523_v22 }
0x1154   :  { %1975 = vrot.lane.b32.xlu1 %v1525_v21, %s5678_s27 }
0x1204   :  { %v1597_v25 = vpop.f32.mrf.mxu1 }
0x1205   :  { %v1598_v39 = vadd.f32 %v5873_v52, %v1597_v25 }
0x1206   :  { %v5106_v40 = vpop.f32.mrf.mxu1 }
0x1207   :  { %v1601_v41 = vmax.f32 %v1598_v39, 0.0 }
0x1209   :  { %5116 = vmatmul.mubr.msk.f32.vlgmr.msra.gmra.mxu1 %vm185_vm3, %v1601_v41 }
0x120a   :  { %5130 = vmatpush3.msra.mxu1 %v5912_v2  ;;  %5137 = vmatprep.mubr.msk.f32.mxu1 %vm5677_vm2, %v5676_v0 }
0x120b   :  { %5131 = vmatprep.subr.mxu1 %v5676_v0 }
0x120c   :  { %5132 = vmatpush3.msra.mxu1 %v5919_v3 }
0x120d   :  { %5133 = vmatprep.subr.mxu1 %v5676_v0 }
0x120e   :  { %5134 = vmatpush3.msra.mxu1 %v5926_v4 }
0x120f   :  { %5135 = vmatprep.subr.mxu1 %v5676_v0 }
0x1210   :  { %5136 = vmatpush3.msra.mxu1 %v5933_v5 }
0x1211   :  { %5151 = vmatprep.subr.mxu1 %v5676_v0 }
0x12c9   :  { %v1671_v42 = vpop.f32.mrf.mxu1 }
0x12ca   :  { %v1672_v45 = vadd.f32 %v5903_v60, %v1671_v42 }
0x12cb   :  { %v5117_v50 = vpop.f32.mrf.mxu1 }
0x12cc   :  { %v1675_v51 = vmax.f32 %v1672_v45, 0.0 }
0x12ce   :  { %5127 = vmatmul.mubr.msk.f32.vlgmr.msra.gmra.mxu0 %vm185_vm3, %v1675_v51 }
0x12cf   :  { %5141 = vmatpush3.msra.mxu0 %v5940_v6  ;;  %5148 = vmatprep.mubr.msk.f32.mxu0 %vm5677_vm2, %v5676_v0 }
0x12d0   :  { %5142 = vmatprep.subr.mxu0 %v5676_v0 }
0x12d1   :  { %5143 = vmatpush3.msra.mxu0 %v5960_v13 }
0x12d2   :  { %5144 = vmatprep.subr.mxu0 %v5676_v0 }
0x12d3   :  { %5145 = vmatpush3.msra.mxu0 %v5967_v14 }
0x12d4   :  { %5146 = vmatprep.subr.mxu0 %v5676_v0 }
0x12d5   :  { %5147 = vmatpush3.msra.mxu0 %v5974_v15 }
0x12d6   :  { %5162 = vmatprep.subr.mxu0 %v5676_v0 }
0x138e   :  { %v1745_v53 = vpop.f32.mrf.mxu0 }
0x138f   :  { %v1746_v54 = vadd.f32 %v5947_v7, %v1745_v53 }
0x1390   :  { %v5128_v55 = vpop.f32.mrf.mxu0 }
0x1391   :  { %5587 = vtanh.f32 %v1746_v54  ;;  %v6429_v54 = vld [vmem:[%s6945_s1 + $0xd8] sm:$0xff] }
0x139e   :  { %v5588_v56 = vpop.eup %5587 }
0x139f   :  { %v1750_v61 = vmul.f32 2.0, %v5588_v56  ;;  %5138 = vmatmul.mubr.msk.f32.vlgmr.msra.gmra.mxu1 %vm185_vm3, %v5588_v56 }
0x13a0   :  { %5152 = vmatpush3.msra.mxu1 %v5980_v18  ;;  %5159 = vmatprep.mubr.msk.f32.mxu1 %vm5677_vm2, %v5676_v0 }
0x13a1   :  { %4537 = vst.msk [vmem:[%s6948_s3 + $0x8] sm:$0xf] %vm647_vm4, %v1750_v61  ;;  %5153 = vmatprep.subr.mxu1 %v5676_v0 }
0x13a2   :  { %5154 = vmatpush3.msra.mxu1 %v5997_v26 }
0x13a3   :  { %5155 = vmatprep.subr.mxu1 %v5676_v0 }
0x13a4   :  { %5156 = vmatpush3.msra.mxu1 %v6004_v27 }
0x13a5   :  { %5157 = vmatprep.subr.mxu1 %v5676_v0 }
0x13a6   :  { %5158 = vmatpush3.msra.mxu1 %v6011_v28 }
0x13a7   :  { %5181 = vmatprep.subr.mxu1 %v5676_v0 }
0x145f   :  { %v1822_v62 = vpop.f32.mrf.mxu1 }
0x1460   :  { %v1823_v63 = vadd.f32 %v5988_v19, %v1822_v62 }
0x1461   :  { %v5139_v1 = vpop.f32.mrf.mxu1 }
0x1462   :  { %v1826_v8 = vmax.f32 %v1823_v63, 0.0  ;;  %v6439_v1 = vld [vmem:[%s6945_s1 + $0x130] sm:$0xff] }
0x1464   :  { %5149 = vmatmul.mubr.msk.f32.vlgmr.msra.gmra.mxu0 %vm185_vm3, %v1826_v8  ;;  %v6455_v8 = vld [vmem:[%s6945_s1 + $0x120] sm:$0xff] }
0x1465   :  { %5163 = vmatpush3.msra.mxu0 %v6017_v33  ;;  %5178 = vmatprep.mubr.msk.f32.mxu0 %vm5677_vm2, %v5676_v0 }
0x1466   :  { %5164 = vmatprep.subr.mxu0 %v5676_v0 }
0x1467   :  { %5165 = vmatpush3.msra.mxu0 %v6022_v34 }
0x1468   :  { %5166 = vmatprep.subr.mxu0 %v5676_v0 }
0x1469   :  { %5167 = vmatpush3.msra.mxu0 %v6030_v35 }
0x146a   :  { %5168 = vmatprep.subr.mxu0 %v5676_v0 }
0x146b   :  { %5169 = vmatpush3.msra.mxu0 %v6037_v37 }
0x146c   :  { %5170 = vmatprep.subr.mxu0 %v5676_v0 }
0x146d   :  { %5171 = vmatpush3.msra.mxu0 %v5757_v16 }
0x146e   :  { %5172 = vmatprep.subr.mxu0 %v5676_v0 }
0x146f   :  { %5173 = vmatpush3.msra.mxu0 %v5762_v17 }
0x1470   :  { %5174 = vmatprep.subr.mxu0 %v5676_v0 }
0x1471   :  { %5175 = vmatpush3.msra.mxu0 %v5777_v23  ;;  %v1976_v23 = vpop.permute.xlu1 %1975 }
0x1472   :  { %5176 = vmatprep.subr.mxu0 %v5676_v0 }
0x1473   :  { %5177 = vmatpush3.msra.mxu0 %v5784_v24 }
0x1474   :  { %5203 = vmatprep.subr.mxu0 %v5676_v0 }
0x1524   :  { %v1896_v9 = vpop.f32.mrf.mxu0 }
0x1525   :  { %v1897_v10 = vadd.f32 %v6054_v38, %v1896_v9  ;;  %v6462_v9 = vld [vmem:[%s6945_s1 + $0x118] sm:$0xff] }
0x1526   :  { %v5150_v12 = vpop.f32.mrf.mxu0 }
0x1527   :  { %v1900_v20 = vmax.f32 %v1897_v10, 0.0  ;;  %v6469_v12 = vld [vmem:[%s6947_s2 + $0x40] ss:$0 sm:$0xff] }
0x1529   :  { %5160 = vmatmul.mubr.msk.f32.vlgmr.msra.gmra.mxu1 %vm185_vm3, %v1900_v20 }
0x152a   :  { %5182 = vmatpush3.msra.mxu1 %v5797_v29  ;;  %5189 = vmatprep.mubr.msk.f32.mxu1 %vm5677_vm2, %v5676_v0 }
0x152b   :  { %5183 = vmatprep.subr.mxu1 %v5676_v0 }
0x152c   :  { %5184 = vmatpush3.msra.mxu1 %v5802_v30 }
0x152d   :  { %5185 = vmatprep.subr.mxu1 %v5676_v0 }
0x152e   :  { %5186 = vmatpush3.msra.mxu1 %v5809_v31 }
0x152f   :  { %5187 = vmatprep.subr.mxu1 %v5676_v0 }
0x1530   :  { %5188 = vmatpush3.msra.mxu1 %v5824_v36 }
0x1531   :  { %5192 = vmatprep.subr.mxu1 %v5676_v0 }
0x15e9   :  { %v1970_v16 = vpop.f32.mrf.mxu1 }
0x15ea   :  { %v1971_v17 = vadd.f32 %v6071_v43, %v1970_v16 }
0x15eb   :  { %v5161_v24 = vpop.f32.mrf.mxu1 }
0x15ec   :  { %v1978_v29 = vsel %vm185_vm3, %v1971_v17, %v1976_v23 }
0x15ed   :  { %5179 = vmatmul.mubr.msk.f32.vlgmr.msra.gmra.mxu0 %vm875_vm5, %v1978_v29 }
0x15ee   :  { %5204 = vmatpush3.msra.mxu0 %v5865_v49  ;;  %5211 = vmatprep.mubr.msk.f32.mxu0 %vm5677_vm2, %v5676_v0 }
0x15ef   :  { %5205 = vmatprep.subr.mxu0 %v5676_v0 }
0x15f0   :  { %5206 = vmatpush3.msra.mxu0 %v5882_v57 }
0x15f1   :  { %5207 = vmatprep.subr.mxu0 %v5676_v0 }
0x15f2   :  { %5208 = vmatpush3.msra.mxu0 %v5889_v58 }
0x15f3   :  { %5209 = vmatprep.subr.mxu0 %v5676_v0 }
0x15f4   :  { %5210 = vmatpush3.msra.mxu0 %v5896_v59 }
0x15f5   :  { %5225 = vmatprep.subr.mxu0 %v5676_v0 }
0x16ad   :  { %v2048_v30 = vpop.f32.mrf.mxu0 }
0x16ae   :  { %v2049_v31 = vadd.f32 %v5818_v32, %v2048_v30 }
0x16af   :  { %v5180_v36 = vpop.f32.mrf.mxu0 }
0x16b0   :  { %5589 = vtanh.f32 %v2049_v31  ;;  %v4542_v22 = vmul.f32 -1.442695, %v2049_v31 }
0x16b2   :  { %5591 = vpow2.f32 %v4542_v22 }
0x16bd   :  { %v5590_v49 = vpop.eup %5589 }
0x16be   :  { %2061 = vrot.lane.b32.xlu0 %v5590_v49, %s5678_s27 }
0x16bf   :  { %v5592_v57 = vpop.eup %5591 }
0x16c0   :  { %v2055_v21 = vadd.f32 1.0, %v5592_v57 }
0x16c2   :  { %5593 = vrcp.f32 %v2055_v21 }
0x16cf   :  { %v5594_v58 = vpop.eup %5593 }
0x16d0   :  { %v2059_v59 = vmul.f32 %v5594_v58, %v6196_v11 }
0x1730   :  { %v2062_v25 = vpop.permute.xlu0 %2061 }
0x1731   :  { %v2064_v39 = vmul.f32 %v5594_v58, %v2062_v25  ;;  %v6485_v25 = vld [vmem:[%s6945_s1 + $0x110] sm:$0xff] }
0x1733   :  { %2066 = vrot.lane.b32.xlu1 %v2064_v39, %s5680_s4  ;;  %v6494_v39 = vld [vmem:[%s6945_s1 + $0x108] sm:$0xff] }
0x17a5   :  { %v2067_v40 = vpop.permute.xlu1 %2066 }
0x17a6   :  { %v6303_v41 = vadd.f32 %v2067_v40, %v2059_v59  ;;  %v6501_v59 = vld [vmem:[%s6945_s1 + $0x100] sm:$0xff]  ;;  %v6508_v40 = vld [vmem:[%s6945_s1 + $0xf8] sm:$0xff] }
0x17a8   :  { %5595 = vtanh.f32 %v6303_v41  ;;  %2077 = vrot.lane.b32.xlu0 %v6303_v41, %s5679_s30 }
0x17b5   :  { %v5596_v32 = vpop.eup %5595 }
0x17b6   :  { %2072 = vrot.lane.b32.xlu1 %v5596_v32, %s5678_s27 }
0x181a   :  { %v2078_v42 = vpop.permute.xlu0 %2077 }
0x181b   :  { %5190 = vmatmul.mubr.msk.f32.vlgmr.msra.gmra.mxu1 %vm185_vm3, %v2078_v42 }
0x181c   :  { %5193 = vmatpush3.msra.mxu1 %v5835_v44  ;;  %5200 = vmatprep.mubr.msk.f32.mxu1 %vm5677_vm2, %v5676_v0 }
0x181d   :  { %5194 = vmatprep.subr.mxu1 %v5676_v0 }
0x181e   :  { %5195 = vmatpush3.msra.mxu1 %v5844_v46 }
0x181f   :  { %5196 = vmatprep.subr.mxu1 %v5676_v0 }
0x1820   :  { %5197 = vmatpush3.msra.mxu1 %v5851_v47 }
0x1821   :  { %5198 = vmatprep.subr.mxu1 %v5676_v0 }
0x1822   :  { %5199 = vmatpush3.msra.mxu1 %v5858_v48 }
0x1823   :  { %5214 = vmatprep.subr.mxu1 %v5676_v0 }
0x1828   :  { %v2073_v11 = vpop.permute.xlu1 %2072 }
0x1829   :  { %v2075_v45 = vmul.f32 %v5594_v58, %v2073_v11  ;;  %v6516_v11 = vld [vmem:[%s6945_s1 + $0x138] ss:$0 sm:$0xff] }
0x182b   :  { %2525 = vrot.lane.b32.xlu0 %v2075_v45, %s5678_s27 }
0x189d   :  { %v2526_v61 = vpop.permute.xlu0 %2525 }
0x18db   :  { %v2147_v44 = vpop.f32.mrf.mxu1 }
0x18dc   :  { %v2148_v50 = vadd.f32 %v5873_v52, %v2147_v44 }
0x18dd   :  { %v5191_v51 = vpop.f32.mrf.mxu1 }
0x18de   :  { %v2151_v53 = vmax.f32 %v2148_v50, 0.0  ;;  %v6523_v51 = vld [vmem:[%s6945_s1 + $0x78] sm:$0xff] }
0x18e0   :  { %5201 = vmatmul.mubr.msk.f32.vlgmr.msra.gmra.mxu1 %vm185_vm3, %v2151_v53  ;;  %v6532_v53 = vld [vmem:[%s6945_s1 + $0x70] sm:$0xff] }
0x18e1   :  { %5215 = vmatpush3.msra.mxu1 %v5912_v2  ;;  %5222 = vmatprep.mubr.msk.f32.mxu1 %vm5677_vm2, %v5676_v0 }
0x18e2   :  { %5216 = vmatprep.subr.mxu1 %v5676_v0 }
0x18e3   :  { %5217 = vmatpush3.msra.mxu1 %v5919_v3 }
0x18e4   :  { %5218 = vmatprep.subr.mxu1 %v5676_v0 }
0x18e5   :  { %5219 = vmatpush3.msra.mxu1 %v5926_v4 }
0x18e6   :  { %5220 = vmatprep.subr.mxu1 %v5676_v0 }
0x18e7   :  { %5221 = vmatpush3.msra.mxu1 %v5933_v5 }
0x18e8   :  { %5236 = vmatprep.subr.mxu1 %v5676_v0 }
0x19a0   :  { %v2221_v46 = vpop.f32.mrf.mxu1 }
0x19a1   :  { %v2222_v47 = vadd.f32 %v5903_v60, %v2221_v46  ;;  %v6539_v46 = vld [vmem:[%s6945_s1 + $0x68] sm:$0xff] }
0x19a2   :  { %v5202_v48 = vpop.f32.mrf.mxu1 }
0x19a3   :  { %v2225_v52 = vmax.f32 %v2222_v47, 0.0  ;;  %v6546_v47 = vld [vmem:[%s6945_s1 + $0x60] sm:$0xff] }
0x19a5   :  { %5212 = vmatmul.mubr.msk.f32.vlgmr.msra.gmra.mxu0 %vm185_vm3, %v2225_v52  ;;  %v6553_v52 = vld [vmem:[%s6945_s1 + $0x140] ss:$0 sm:$0xff] }
0x19a6   :  { %5226 = vmatpush3.msra.mxu0 %v5940_v6  ;;  %5233 = vmatprep.mubr.msk.f32.mxu0 %vm5677_vm2, %v5676_v0 }
0x19a7   :  { %5227 = vmatprep.subr.mxu0 %v5676_v0 }
0x19a8   :  { %5228 = vmatpush3.msra.mxu0 %v5960_v13 }
0x19a9   :  { %5229 = vmatprep.subr.mxu0 %v5676_v0 }
0x19aa   :  { %5230 = vmatpush3.msra.mxu0 %v5967_v14 }
0x19ab   :  { %5231 = vmatprep.subr.mxu0 %v5676_v0 }
0x19ac   :  { %5232 = vmatpush3.msra.mxu0 %v5974_v15  ;;  %v6376_v15 = vld [vmem:[%s6947_s2 + $0x18] sm:$0xff] }
0x19ad   :  { %5247 = vmatprep.subr.mxu0 %v5676_v0 }
0x1a65   :  { %v2295_v60 = vpop.f32.mrf.mxu0 }
0x1a66   :  { %v2296_v2 = vadd.f32 %v5947_v7, %v2295_v60 }
0x1a67   :  { %v5213_v3 = vpop.f32.mrf.mxu0 }
0x1a68   :  { %5597 = vtanh.f32 %v2296_v2 }
0x1a75   :  { %v5598_v4 = vpop.eup %5597 }
0x1a76   :  { %v2300_v5 = vmul.f32 2.0, %v5598_v4  ;;  %5223 = vmatmul.mubr.msk.f32.vlgmr.msra.gmra.mxu1 %vm185_vm3, %v5598_v4  ;;  %v6560_v4 = vld [vmem:[%s6945_s1 + $0x98] sm:$0xff] }
0x1a77   :  { %5237 = vmatpush3.msra.mxu1 %v5980_v18  ;;  %5244 = vmatprep.mubr.msk.f32.mxu1 %vm5677_vm2, %v5676_v0  ;;  %v6383_v18 = vld [vmem:[%s6947_s2 + $0x10] sm:$0xff] }
0x1a78   :  { %4546 = vst.msk [vmem:[%s6948_s3 + $0xc] sm:$0xf] %vm647_vm4, %v2300_v5  ;;  %5238 = vmatprep.subr.mxu1 %v5676_v0  ;;  %v6569_v5 = vld [vmem:[%s6945_s1 + $0x90] sm:$0xff] }
0x1a79   :  { %5239 = vmatpush3.msra.mxu1 %v5997_v26  ;;  %v6397_v26 = vld [vmem:[%s6947_s2] sm:$0xff] }
0x1a7a   :  { %5240 = vmatprep.subr.mxu1 %v5676_v0 }
0x1a7b   :  { %5241 = vmatpush3.msra.mxu1 %v6004_v27 }
0x1a7c   :  { %5242 = vmatprep.subr.mxu1 %v5676_v0 }
0x1a7d   :  { %5243 = vmatpush3.msra.mxu1 %v6011_v28 }
0x1a7e   :  { %5266 = vmatprep.subr.mxu1 %v5676_v0 }
0x1b36   :  { %v2372_v6 = vpop.f32.mrf.mxu1 }
0x1b37   :  { %v2373_v7 = vadd.f32 %v5988_v19, %v2372_v6  ;;  %v6390_v19 = vld [vmem:[%s6947_s2 + $0x8] sm:$0xff] }
0x1b38   :  { %v5224_v13 = vpop.f32.mrf.mxu1  ;;  %v6576_v6 = vld [vmem:[%s6945_s1 + $0x88] sm:$0xff] }
0x1b39   :  { %v2376_v14 = vmax.f32 %v2373_v7, 0.0  ;;  %v6583_v7 = vld [vmem:[%s6945_s1 + $0x80] sm:$0xff] }
0x1b3b   :  { %5234 = vmatmul.mubr.msk.f32.vlgmr.msra.gmra.mxu0 %vm185_vm3, %v2376_v14  ;;  %v6590_v14 = vld [vmem:[%s6945_s1 + $0x148] ss:$0 sm:$0xff] }
0x1b3c   :  { %5248 = vmatpush3.msra.mxu0 %v6017_v33  ;;  %5263 = vmatprep.mubr.msk.f32.mxu0 %vm5677_vm2, %v5676_v0 }
0x1b3d   :  { %5249 = vmatprep.subr.mxu0 %v5676_v0 }
0x1b3e   :  { %5250 = vmatpush3.msra.mxu0 %v6022_v34 }
0x1b3f   :  { %5251 = vmatprep.subr.mxu0 %v5676_v0 }
0x1b40   :  { %5252 = vmatpush3.msra.mxu0 %v6030_v35  ;;  %v6406_v35 = vld [vmem:[%s6945_s1 + $0xf0] sm:$0xff] }
0x1b41   :  { %5253 = vmatprep.subr.mxu0 %v5676_v0 }
0x1b42   :  { %5254 = vmatpush3.msra.mxu0 %v6037_v37  ;;  %v6415_v37 = vld [vmem:[%s6945_s1 + $0xe8] sm:$0xff] }
0x1b43   :  { %5255 = vmatprep.subr.mxu0 %v5676_v0 }
0x1b44   :  { %5256 = vmatpush3.msra.mxu0 %v6376_v15 }
0x1b45   :  { %5257 = vmatprep.subr.mxu0 %v5676_v0 }
0x1b46   :  { %5258 = vmatpush3.msra.mxu0 %v6383_v18 }
0x1b47   :  { %5259 = vmatprep.subr.mxu0 %v5676_v0 }
0x1b48   :  { %5260 = vmatpush3.msra.mxu0 %v6390_v19 }
0x1b49   :  { %5261 = vmatprep.subr.mxu0 %v5676_v0 }
0x1b4a   :  { %5262 = vmatpush3.msra.mxu0 %v6397_v26 }
0x1b4b   :  { %5288 = vmatprep.subr.mxu0 %v5676_v0 }
0x1bfb   :  { %v2446_v27 = vpop.f32.mrf.mxu0 }
0x1bfc   :  { %v2447_v28 = vadd.f32 %v6054_v38, %v2446_v27  ;;  %v6422_v38 = vld [vmem:[%s6945_s1 + $0xe0] sm:$0xff] }
0x1bfd   :  { %v5235_v33 = vpop.f32.mrf.mxu0 }
0x1bfe   :  { %v2450_v34 = vmax.f32 %v2447_v28, 0.0 }
0x1c00   :  { %5245 = vmatmul.mubr.msk.f32.vlgmr.msra.gmra.mxu1 %vm185_vm3, %v2450_v34 }
0x1c01   :  { %5267 = vmatpush3.msra.mxu1 %v6406_v35  ;;  %5274 = vmatprep.mubr.msk.f32.mxu1 %vm5677_vm2, %v5676_v0 }
0x1c02   :  { %5268 = vmatprep.subr.mxu1 %v5676_v0 }
0x1c03   :  { %5269 = vmatpush3.msra.mxu1 %v6415_v37 }
0x1c04   :  { %5270 = vmatprep.subr.mxu1 %v5676_v0 }
0x1c05   :  { %5271 = vmatpush3.msra.mxu1 %v6422_v38 }
0x1c06   :  { %5272 = vmatprep.subr.mxu1 %v5676_v0 }
0x1c07   :  { %5273 = vmatpush3.msra.mxu1 %v6429_v54 }
0x1c08   :  { %5277 = vmatprep.subr.mxu1 %v5676_v0 }
0x1cc0   :  { %v2520_v55 = vpop.f32.mrf.mxu1 }
0x1cc1   :  { %v2521_v56 = vadd.f32 %v6071_v43, %v2520_v55  ;;  %v6448_v43 = vld [vmem:[%s6945_s1 + $0x128] sm:$0xff]  ;;  %v6597_v55 = vld [vmem:[%s6945_s1 + $0xb8] sm:$0xff] }
0x1cc2   :  { %v5246_v62 = vpop.f32.mrf.mxu1 }
0x1cc3   :  { %v2528_v63 = vsel %vm185_vm3, %v2521_v56, %v2526_v61  ;;  %v6610_v56 = vld [vmem:[%s6945_s1 + $0xb0] sm:$0xff]  ;;  %v6617_v61 = vld [vmem:[%s6945_s1 + $0xa8] sm:$0xff]  ;;  %v6624_v62 = vld [vmem:[%s6945_s1 + $0xa0] sm:$0xff] }
0x1cc4   :  { %5264 = vmatmul.mubr.msk.f32.vlgmr.msra.gmra.mxu0 %vm875_vm5, %v2528_v63 }
0x1cc5   :  { %5289 = vmatpush3.msra.mxu0 %v6439_v1  ;;  %5296 = vmatprep.mubr.msk.f32.mxu0 %vm5677_vm2, %v5676_v0 }
0x1cc6   :  { %5290 = vmatprep.subr.mxu0 %v5676_v0 }
0x1cc7   :  { %5291 = vmatpush3.msra.mxu0 %v6448_v43 }
0x1cc8   :  { %5292 = vmatprep.subr.mxu0 %v5676_v0 }
0x1cc9   :  { %5293 = vmatpush3.msra.mxu0 %v6455_v8 }
0x1cca   :  { %5294 = vmatprep.subr.mxu0 %v5676_v0 }
0x1ccb   :  { %5295 = vmatpush3.msra.mxu0 %v6462_v9 }
0x1ccc   :  { %5310 = vmatprep.subr.mxu0 %v5676_v0 }
0x1d84   :  { %v2598_v10 = vpop.f32.mrf.mxu0 }
0x1d85   :  { %v2599_v20 = vadd.f32 %v6469_v12, %v2598_v10  ;;  %v6631_v10 = vld [vmem:[%s6945_s1 + $0xc0] ss:$0 sm:$0xff] }
0x1d86   :  { %v5265_v16 = vpop.f32.mrf.mxu0 }
0x1d87   :  { %5599 = vtanh.f32 %v2599_v20  ;;  %v4551_v23 = vmul.f32 -1.442695, %v2599_v20 }
0x1d89   :  { %5601 = vpow2.f32 %v4551_v23  ;;  %v6638_v23 = vld [vmem:[%s6947_s2 + $0x38] sm:$0xff] }
0x1d94   :  { %v5600_v17 = vpop.eup %5599 }
0x1d95   :  { %2611 = vrot.lane.b32.xlu1 %v5600_v17, %s5678_s27 }
0x1d96   :  { %v5602_v24 = vpop.eup %5601 }
0x1d97   :  { %v2605_v29 = vadd.f32 1.0, %v5602_v24  ;;  %v6647_v24 = vld [vmem:[%s6947_s2 + $0x30] sm:$0xff] }
0x1d99   :  { %5603 = vrcp.f32 %v2605_v29  ;;  %v6654_v29 = vld [vmem:[%s6947_s2 + $0x28] sm:$0xff] }
0x1da6   :  { %v5604_v30 = vpop.eup %5603 }
0x1da7   :  { %v2609_v49 = vmul.f32 %v5604_v30, %v6303_v41 }
0x1e07   :  { %v2612_v31 = vpop.permute.xlu1 %2611 }
0x1e08   :  { %v2614_v36 = vmul.f32 %v5604_v30, %v2612_v31 }
0x1e0a   :  { %2616 = vrot.lane.b32.xlu0 %v2614_v36, %s5680_s4  ;;  %v6676_v36 = vld [vmem:[%s6945_s1 + $0xc8] ss:$0 sm:$0xff] }
0x1e7c   :  { %v2617_v22 = vpop.permute.xlu0 %2616 }
0x1e7d   :  { %v6475_v57 = vadd.f32 %v2617_v22, %v2609_v49 }
0x1e7f   :  { %5605 = vtanh.f32 %v6475_v57  ;;  %2627 = vrot.lane.b32.xlu1 %v6475_v57, %s5679_s30 }
0x1e8c   :  { %v5606_v21 = vpop.eup %5605 }
0x1e8d   :  { %2622 = vrot.lane.b32.xlu0 %v5606_v21, %s5678_s27 }
0x1ef1   :  { %v2628_v58 = vpop.permute.xlu1 %2627 }
0x1ef2   :  { %5275 = vmatmul.mubr.msk.f32.vlgmr.msra.gmra.mxu1 %vm185_vm3, %v2628_v58 }
0x1ef3   :  { %5278 = vmatpush3.msra.mxu1 %v6485_v25  ;;  %5285 = vmatprep.mubr.msk.f32.mxu1 %vm5677_vm2, %v5676_v0 }
0x1ef4   :  { %5279 = vmatprep.subr.mxu1 %v5676_v0 }
0x1ef5   :  { %5280 = vmatpush3.msra.mxu1 %v6494_v39 }
0x1ef6   :  { %5281 = vmatprep.subr.mxu1 %v5676_v0 }
0x1ef7   :  { %5282 = vmatpush3.msra.mxu1 %v6501_v59 }
0x1ef8   :  { %5283 = vmatprep.subr.mxu1 %v5676_v0 }
0x1ef9   :  { %5284 = vmatpush3.msra.mxu1 %v6508_v40 }
0x1efa   :  { %5299 = vmatprep.subr.mxu1 %v5676_v0 }
0x1eff   :  { %v2623_v41 = vpop.permute.xlu0 %2622 }
0x1f00   :  { %v2625_v32 = vmul.f32 %v5604_v30, %v2623_v41  ;;  %v6661_v30 = vld [vmem:[%s6947_s2 + $0x20] sm:$0xff]  ;;  %v6693_v41 = vld [vmem:[%s6945_s1 + $0xd0] ss:$0 sm:$0xff] }
0x1f02   :  { %3075 = vrot.lane.b32.xlu1 %v2625_v32, %s5678_s27 }
0x1fb2   :  { %v2697_v42 = vpop.f32.mrf.mxu1 }
0x1fb3   :  { %v2698_v45 = vadd.f32 %v6516_v11, %v2697_v42  ;;  %v3076_v42 = vpop.permute.xlu1 %3075 }
0x1fb4   :  { %v5276_v44 = vpop.f32.mrf.mxu1 }
0x1fb5   :  { %v2701_v50 = vmax.f32 %v2698_v45, 0.0 }
0x1fb7   :  { %5286 = vmatmul.mubr.msk.f32.vlgmr.msra.gmra.mxu1 %vm185_vm3, %v2701_v50 }
0x1fb8   :  { %5300 = vmatpush3.msra.mxu1 %v6523_v51  ;;  %5307 = vmatprep.mubr.msk.f32.mxu1 %vm5677_vm2, %v5676_v0 }
0x1fb9   :  { %5301 = vmatprep.subr.mxu1 %v5676_v0 }
0x1fba   :  { %5302 = vmatpush3.msra.mxu1 %v6532_v53 }
0x1fbb   :  { %5303 = vmatprep.subr.mxu1 %v5676_v0 }
0x1fbc   :  { %5304 = vmatpush3.msra.mxu1 %v6539_v46 }
0x1fbd   :  { %5305 = vmatprep.subr.mxu1 %v5676_v0 }
0x1fbe   :  { %5306 = vmatpush3.msra.mxu1 %v6546_v47 }
0x1fbf   :  { %5321 = vmatprep.subr.mxu1 %v5676_v0 }
0x2077   :  { %v2771_v48 = vpop.f32.mrf.mxu1 }
0x2078   :  { %v2772_v60 = vadd.f32 %v6553_v52, %v2771_v48 }
0x2079   :  { %v5287_v2 = vpop.f32.mrf.mxu1 }
0x207a   :  { %v2775_v3 = vmax.f32 %v2772_v60, 0.0 }
0x207c   :  { %5297 = vmatmul.mubr.msk.f32.vlgmr.msra.gmra.mxu0 %vm185_vm3, %v2775_v3 }
0x207d   :  { %5311 = vmatpush3.msra.mxu0 %v6560_v4  ;;  %5318 = vmatprep.mubr.msk.f32.mxu0 %vm5677_vm2, %v5676_v0 }
0x207e   :  { %5312 = vmatprep.subr.mxu0 %v5676_v0 }
0x207f   :  { %5313 = vmatpush3.msra.mxu0 %v6569_v5 }
0x2080   :  { %5314 = vmatprep.subr.mxu0 %v5676_v0 }
0x2081   :  { %5315 = vmatpush3.msra.mxu0 %v6576_v6 }
0x2082   :  { %5316 = vmatprep.subr.mxu0 %v5676_v0 }
0x2083   :  { %5317 = vmatpush3.msra.mxu0 %v6583_v7 }
0x2084   :  { %5332 = vmatprep.subr.mxu0 %v5676_v0 }
0x213c   :  { %v2845_v13 = vpop.f32.mrf.mxu0 }
0x213d   :  { %v2846_v27 = vadd.f32 %v6590_v14, %v2845_v13 }
0x213e   :  { %v5298_v28 = vpop.f32.mrf.mxu0 }
0x213f   :  { %5607 = vtanh.f32 %v2846_v27 }
0x214c   :  { %v5608_v33 = vpop.eup %5607 }
0x214d   :  { %v2850_v34 = vmul.f32 2.0, %v5608_v33  ;;  %5308 = vmatmul.mubr.msk.f32.vlgmr.msra.gmra.mxu1 %vm185_vm3, %v5608_v33 }
0x214e   :  { %5322 = vmatpush3.msra.mxu1 %v6597_v55  ;;  %5329 = vmatprep.mubr.msk.f32.mxu1 %vm5677_vm2, %v5676_v0 }
0x214f   :  { %4555 = vst.msk [vmem:[%s6948_s3 + $0x10] sm:$0xf] %vm647_vm4, %v2850_v34  ;;  %5323 = vmatprep.subr.mxu1 %v5676_v0 }
0x2150   :  { %5324 = vmatpush3.msra.mxu1 %v6610_v56 }
0x2151   :  { %5325 = vmatprep.subr.mxu1 %v5676_v0 }
0x2152   :  { %5326 = vmatpush3.msra.mxu1 %v6617_v61 }
0x2153   :  { %5327 = vmatprep.subr.mxu1 %v5676_v0 }
0x2154   :  { %5328 = vmatpush3.msra.mxu1 %v6624_v62 }
0x2155   :  { %5351 = vmatprep.subr.mxu1 %v5676_v0 }
0x220d   :  { %v2922_v63 = vpop.f32.mrf.mxu1 }
0x220e   :  { %v2923_v20 = vadd.f32 %v6631_v10, %v2922_v63 }
0x220f   :  { %v5309_v16 = vpop.f32.mrf.mxu1 }
0x2210   :  { %v2926_v17 = vmax.f32 %v2923_v20, 0.0 }
0x2212   :  { %5319 = vmatmul.mubr.msk.f32.vlgmr.msra.gmra.mxu0 %vm185_vm3, %v2926_v17 }
0x2213   :  { %5333 = vmatpush3.msra.mxu0 %v6638_v23  ;;  %5348 = vmatprep.mubr.msk.f32.mxu0 %vm5677_vm2, %v5676_v0 }
0x2214   :  { %5334 = vmatprep.subr.mxu0 %v5676_v0 }
0x2215   :  { %5335 = vmatpush3.msra.mxu0 %v6647_v24 }
0x2216   :  { %5336 = vmatprep.subr.mxu0 %v5676_v0 }
0x2217   :  { %5337 = vmatpush3.msra.mxu0 %v6654_v29 }
0x2218   :  { %5338 = vmatprep.subr.mxu0 %v5676_v0 }
0x2219   :  { %5339 = vmatpush3.msra.mxu0 %v6661_v30 }
0x221a   :  { %5340 = vmatprep.subr.mxu0 %v5676_v0 }
0x221b   :  { %5341 = vmatpush3.msra.mxu0 %v6376_v15 }
0x221c   :  { %5342 = vmatprep.subr.mxu0 %v5676_v0 }
0x221d   :  { %5343 = vmatpush3.msra.mxu0 %v6383_v18 }
0x221e   :  { %5344 = vmatprep.subr.mxu0 %v5676_v0 }
0x221f   :  { %5345 = vmatpush3.msra.mxu0 %v6390_v19 }
0x2220   :  { %5346 = vmatprep.subr.mxu0 %v5676_v0 }
0x2221   :  { %5347 = vmatpush3.msra.mxu0 %v6397_v26 }
0x2222   :  { %5373 = vmatprep.subr.mxu0 %v5676_v0 }
0x22d2   :  { %v2996_v31 = vpop.f32.mrf.mxu0 }
0x22d3   :  { %v2997_v49 = vadd.f32 %v6676_v36, %v2996_v31 }
0x22d4   :  { %v5320_v22 = vpop.f32.mrf.mxu0 }
0x22d5   :  { %v3000_v21 = vmax.f32 %v2997_v49, 0.0 }
0x22d7   :  { %5330 = vmatmul.mubr.msk.f32.vlgmr.msra.gmra.mxu1 %vm185_vm3, %v3000_v21 }
0x22d8   :  { %5352 = vmatpush3.msra.mxu1 %v6406_v35  ;;  %5359 = vmatprep.mubr.msk.f32.mxu1 %vm5677_vm2, %v5676_v0 }
0x22d9   :  { %5353 = vmatprep.subr.mxu1 %v5676_v0 }
0x22da   :  { %5354 = vmatpush3.msra.mxu1 %v6415_v37 }
0x22db   :  { %5355 = vmatprep.subr.mxu1 %v5676_v0 }
0x22dc   :  { %5356 = vmatpush3.msra.mxu1 %v6422_v38 }
0x22dd   :  { %5357 = vmatprep.subr.mxu1 %v5676_v0 }
0x22de   :  { %5358 = vmatpush3.msra.mxu1 %v6429_v54 }
0x22df   :  { %5362 = vmatprep.subr.mxu1 %v5676_v0 }
0x2397   :  { %v3070_v58 = vpop.f32.mrf.mxu1 }
0x2398   :  { %v3071_v32 = vadd.f32 %v6693_v41, %v3070_v58 }
0x2399   :  { %v5331_v45 = vpop.f32.mrf.mxu1 }
0x239a   :  { %v3078_v44 = vsel %vm185_vm3, %v3071_v32, %v3076_v42 }
0x239b   :  { %5349 = vmatmul.mubr.msk.f32.vlgmr.msra.gmra.mxu0 %vm875_vm5, %v3078_v44 }
0x239c   :  { %5374 = vmatpush3.msra.mxu0 %v6439_v1  ;;  %5381 = vmatprep.mubr.msk.f32.mxu0 %vm5677_vm2, %v5676_v0 }
0x239d   :  { %5375 = vmatprep.subr.mxu0 %v5676_v0 }
0x239e   :  { %5376 = vmatpush3.msra.mxu0 %v6448_v43 }
0x239f   :  { %5377 = vmatprep.subr.mxu0 %v5676_v0 }
0x23a0   :  { %5378 = vmatpush3.msra.mxu0 %v6455_v8 }
0x23a1   :  { %5379 = vmatprep.subr.mxu0 %v5676_v0 }
0x23a2   :  { %5380 = vmatpush3.msra.mxu0 %v6462_v9 }
0x23a3   :  { %5395 = vmatprep.subr.mxu0 %v5676_v0 }
0x245b   :  { %v3148_v50 = vpop.f32.mrf.mxu0 }
0x245c   :  { %v3149_v48 = vadd.f32 %v6469_v12, %v3148_v50 }
0x245d   :  { %v5350_v60 = vpop.f32.mrf.mxu0 }
0x245e   :  { %5609 = vtanh.f32 %v3149_v48  ;;  %v4560_v3 = vmul.f32 -1.442695, %v3149_v48 }
0x2460   :  { %5611 = vpow2.f32 %v4560_v3 }
0x246b   :  { %v5610_v2 = vpop.eup %5609 }
0x246c   :  { %3161 = vrot.lane.b32.xlu0 %v5610_v2, %s5678_s27 }
0x246d   :  { %v5612_v13 = vpop.eup %5611 }
0x246e   :  { %v3155_v27 = vadd.f32 1.0, %v5612_v13 }
0x2470   :  { %5613 = vrcp.f32 %v3155_v27 }
0x247d   :  { %v5614_v28 = vpop.eup %5613 }
0x247e   :  { %v3159_v63 = vmul.f32 %v5614_v28, %v6475_v57 }
0x24de   :  { %v3162_v33 = vpop.permute.xlu0 %3161 }
0x24df   :  { %v3164_v34 = vmul.f32 %v5614_v28, %v3162_v33 }
0x24e1   :  { %3166 = vrot.lane.b32.xlu1 %v3164_v34, %s5680_s4 }
0x2553   :  { %v3167_v20 = vpop.permute.xlu1 %3166 }
0x2554   :  { %v6712_v16 = vadd.f32 %v3167_v20, %v3159_v63 }
0x2556   :  { %5615 = vtanh.f32 %v6712_v16  ;;  %3177 = vrot.lane.b32.xlu0 %v6712_v16, %s5679_s30 }
0x2563   :  { %v5616_v17 = vpop.eup %5615 }
0x2564   :  { %3172 = vrot.lane.b32.xlu1 %v5616_v17, %s5678_s27 }
0x25c8   :  { %v3178_v31 = vpop.permute.xlu0 %3177 }
0x25c9   :  { %5360 = vmatmul.mubr.msk.f32.vlgmr.msra.gmra.mxu1 %vm185_vm3, %v3178_v31 }
0x25ca   :  { %5363 = vmatpush3.msra.mxu1 %v6485_v25  ;;  %5370 = vmatprep.mubr.msk.f32.mxu1 %vm5677_vm2, %v5676_v0 }
0x25cb   :  { %5364 = vmatprep.subr.mxu1 %v5676_v0 }
0x25cc   :  { %5365 = vmatpush3.msra.mxu1 %v6494_v39 }
0x25cd   :  { %5366 = vmatprep.subr.mxu1 %v5676_v0 }
0x25ce   :  { %5367 = vmatpush3.msra.mxu1 %v6501_v59 }
0x25cf   :  { %5368 = vmatprep.subr.mxu1 %v5676_v0 }
0x25d0   :  { %5369 = vmatpush3.msra.mxu1 %v6508_v40 }
0x25d1   :  { %5384 = vmatprep.subr.mxu1 %v5676_v0 }
0x25d6   :  { %v3173_v57 = vpop.permute.xlu1 %3172 }
0x25d7   :  { %v3175_v49 = vmul.f32 %v5614_v28, %v3173_v57 }
0x25d9   :  { %3625 = vrot.lane.b32.xlu0 %v3175_v49, %s5678_s27 }
0x2689   :  { %v3247_v22 = vpop.f32.mrf.mxu1 }
0x268a   :  { %v3248_v21 = vadd.f32 %v6516_v11, %v3247_v22  ;;  %v3626_v22 = vpop.permute.xlu0 %3625 }
0x268b   :  { %v5361_v58 = vpop.f32.mrf.mxu1 }
0x268c   :  { %v3251_v32 = vmax.f32 %v3248_v21, 0.0 }
0x268e   :  { %5371 = vmatmul.mubr.msk.f32.vlgmr.msra.gmra.mxu1 %vm185_vm3, %v3251_v32 }
0x268f   :  { %5385 = vmatpush3.msra.mxu1 %v6523_v51  ;;  %5392 = vmatprep.mubr.msk.f32.mxu1 %vm5677_vm2, %v5676_v0 }
0x2690   :  { %5386 = vmatprep.subr.mxu1 %v5676_v0 }
0x2691   :  { %5387 = vmatpush3.msra.mxu1 %v6532_v53 }
0x2692   :  { %5388 = vmatprep.subr.mxu1 %v5676_v0 }
0x2693   :  { %5389 = vmatpush3.msra.mxu1 %v6539_v46 }
0x2694   :  { %5390 = vmatprep.subr.mxu1 %v5676_v0 }
0x2695   :  { %5391 = vmatpush3.msra.mxu1 %v6546_v47 }
0x2696   :  { %5406 = vmatprep.subr.mxu1 %v5676_v0 }
0x274e   :  { %v3321_v42 = vpop.f32.mrf.mxu1 }
0x274f   :  { %v3322_v45 = vadd.f32 %v6553_v52, %v3321_v42 }
0x2750   :  { %v5372_v44 = vpop.f32.mrf.mxu1 }
0x2751   :  { %v3325_v50 = vmax.f32 %v3322_v45, 0.0 }
0x2753   :  { %5382 = vmatmul.mubr.msk.f32.vlgmr.msra.gmra.mxu0 %vm185_vm3, %v3325_v50 }
0x2754   :  { %5396 = vmatpush3.msra.mxu0 %v6560_v4  ;;  %5403 = vmatprep.mubr.msk.f32.mxu0 %vm5677_vm2, %v5676_v0 }
0x2755   :  { %5397 = vmatprep.subr.mxu0 %v5676_v0 }
0x2756   :  { %5398 = vmatpush3.msra.mxu0 %v6569_v5 }
0x2757   :  { %5399 = vmatprep.subr.mxu0 %v5676_v0 }
0x2758   :  { %5400 = vmatpush3.msra.mxu0 %v6576_v6 }
0x2759   :  { %5401 = vmatprep.subr.mxu0 %v5676_v0 }
0x275a   :  { %5402 = vmatpush3.msra.mxu0 %v6583_v7 }
0x275b   :  { %5417 = vmatprep.subr.mxu0 %v5676_v0 }
0x2813   :  { %v3395_v48 = vpop.f32.mrf.mxu0 }
0x2814   :  { %v3396_v60 = vadd.f32 %v6590_v14, %v3395_v48 }
0x2815   :  { %v5383_v2 = vpop.f32.mrf.mxu0 }
0x2816   :  { %5617 = vtanh.f32 %v3396_v60 }
0x2823   :  { %v5618_v3 = vpop.eup %5617 }
0x2824   :  { %v3400_v13 = vmul.f32 2.0, %v5618_v3  ;;  %5393 = vmatmul.mubr.msk.f32.vlgmr.msra.gmra.mxu1 %vm185_vm3, %v5618_v3 }
0x2825   :  { %5407 = vmatpush3.msra.mxu1 %v6597_v55  ;;  %5414 = vmatprep.mubr.msk.f32.mxu1 %vm5677_vm2, %v5676_v0 }
0x2826   :  { %4564 = vst.msk [vmem:[%s6948_s3 + $0x14] sm:$0xf] %vm647_vm4, %v3400_v13  ;;  %5408 = vmatprep.subr.mxu1 %v5676_v0 }
0x2827   :  { %5409 = vmatpush3.msra.mxu1 %v6610_v56 }
0x2828   :  { %5410 = vmatprep.subr.mxu1 %v5676_v0 }
0x2829   :  { %5411 = vmatpush3.msra.mxu1 %v6617_v61 }
0x282a   :  { %5412 = vmatprep.subr.mxu1 %v5676_v0 }
0x282b   :  { %5413 = vmatpush3.msra.mxu1 %v6624_v62 }
0x282c   :  { %5436 = vmatprep.subr.mxu1 %v5676_v0 }
0x28e4   :  { %v3472_v27 = vpop.f32.mrf.mxu1 }
0x28e5   :  { %v3473_v28 = vadd.f32 %v6631_v10, %v3472_v27 }
0x28e6   :  { %v5394_v33 = vpop.f32.mrf.mxu1 }
0x28e7   :  { %v3476_v34 = vmax.f32 %v3473_v28, 0.0 }
0x28e9   :  { %5404 = vmatmul.mubr.msk.f32.vlgmr.msra.gmra.mxu0 %vm185_vm3, %v3476_v34 }
0x28ea   :  { %5418 = vmatpush3.msra.mxu0 %v6638_v23  ;;  %5433 = vmatprep.mubr.msk.f32.mxu0 %vm5677_vm2, %v5676_v0 }
0x28eb   :  { %5419 = vmatprep.subr.mxu0 %v5676_v0 }
0x28ec   :  { %5420 = vmatpush3.msra.mxu0 %v6647_v24 }
0x28ed   :  { %5421 = vmatprep.subr.mxu0 %v5676_v0 }
0x28ee   :  { %5422 = vmatpush3.msra.mxu0 %v6654_v29 }
0x28ef   :  { %5423 = vmatprep.subr.mxu0 %v5676_v0 }
0x28f0   :  { %5424 = vmatpush3.msra.mxu0 %v6661_v30 }
0x28f1   :  { %5425 = vmatprep.subr.mxu0 %v5676_v0 }
0x28f2   :  { %5426 = vmatpush3.msra.mxu0 %v6376_v15 }
0x28f3   :  { %5427 = vmatprep.subr.mxu0 %v5676_v0 }
0x28f4   :  { %5428 = vmatpush3.msra.mxu0 %v6383_v18 }
0x28f5   :  { %5429 = vmatprep.subr.mxu0 %v5676_v0 }
0x28f6   :  { %5430 = vmatpush3.msra.mxu0 %v6390_v19 }
0x28f7   :  { %5431 = vmatprep.subr.mxu0 %v5676_v0 }
0x28f8   :  { %5432 = vmatpush3.msra.mxu0 %v6397_v26 }
0x28f9   :  { %5458 = vmatprep.subr.mxu0 %v5676_v0 }
0x29a9   :  { %v3546_v63 = vpop.f32.mrf.mxu0 }
0x29aa   :  { %v3547_v20 = vadd.f32 %v6676_v36, %v3546_v63 }
0x29ab   :  { %v5405_v17 = vpop.f32.mrf.mxu0 }
0x29ac   :  { %v3550_v31 = vmax.f32 %v3547_v20, 0.0 }
0x29ae   :  { %5415 = vmatmul.mubr.msk.f32.vlgmr.msra.gmra.mxu1 %vm185_vm3, %v3550_v31 }
0x29af   :  { %5437 = vmatpush3.msra.mxu1 %v6406_v35  ;;  %5444 = vmatprep.mubr.msk.f32.mxu1 %vm5677_vm2, %v5676_v0 }
0x29b0   :  { %5438 = vmatprep.subr.mxu1 %v5676_v0 }
0x29b1   :  { %5439 = vmatpush3.msra.mxu1 %v6415_v37 }
0x29b2   :  { %5440 = vmatprep.subr.mxu1 %v5676_v0 }
0x29b3   :  { %5441 = vmatpush3.msra.mxu1 %v6422_v38 }
0x29b4   :  { %5442 = vmatprep.subr.mxu1 %v5676_v0 }
0x29b5   :  { %5443 = vmatpush3.msra.mxu1 %v6429_v54 }
0x29b6   :  { %5447 = vmatprep.subr.mxu1 %v5676_v0 }
0x2a6e   :  { %v3620_v57 = vpop.f32.mrf.mxu1 }
0x2a6f   :  { %v3621_v49 = vadd.f32 %v6693_v41, %v3620_v57 }
0x2a70   :  { %v5416_v21 = vpop.f32.mrf.mxu1 }
0x2a71   :  { %v3628_v58 = vsel %vm185_vm3, %v3621_v49, %v3626_v22 }
0x2a72   :  { %5434 = vmatmul.mubr.msk.f32.vlgmr.msra.gmra.mxu0 %vm875_vm5, %v3628_v58 }
0x2a73   :  { %5459 = vmatpush3.msra.mxu0 %v6439_v1  ;;  %5466 = vmatprep.mubr.msk.f32.mxu0 %vm5677_vm2, %v5676_v0 }
0x2a74   :  { %5460 = vmatprep.subr.mxu0 %v5676_v0 }
0x2a75   :  { %5461 = vmatpush3.msra.mxu0 %v6448_v43 }
0x2a76   :  { %5462 = vmatprep.subr.mxu0 %v5676_v0 }
0x2a77   :  { %5463 = vmatpush3.msra.mxu0 %v6455_v8 }
0x2a78   :  { %5464 = vmatprep.subr.mxu0 %v5676_v0 }
0x2a79   :  { %5465 = vmatpush3.msra.mxu0 %v6462_v9 }
0x2a7a   :  { %5480 = vmatprep.subr.mxu0 %v5676_v0 }
0x2b32   :  { %v3698_v32 = vpop.f32.mrf.mxu0 }
0x2b33   :  { %v3699_v42 = vadd.f32 %v6469_v12, %v3698_v32 }
0x2b34   :  { %v5435_v45 = vpop.f32.mrf.mxu0 }
0x2b35   :  { %5619 = vtanh.f32 %v3699_v42  ;;  %v4569_v50 = vmul.f32 -1.442695, %v3699_v42 }
0x2b37   :  { %5621 = vpow2.f32 %v4569_v50 }
0x2b42   :  { %v5620_v44 = vpop.eup %5619 }
0x2b43   :  { %3711 = vrot.lane.b32.xlu1 %v5620_v44, %s5678_s27 }
0x2b44   :  { %v5622_v48 = vpop.eup %5621 }
0x2b45   :  { %v3705_v60 = vadd.f32 1.0, %v5622_v48 }
0x2b47   :  { %5623 = vrcp.f32 %v3705_v60 }
0x2b54   :  { %v5624_v2 = vpop.eup %5623 }
0x2b55   :  { %v3709_v27 = vmul.f32 %v5624_v2, %v6712_v16 }
0x2bb5   :  { %v3712_v3 = vpop.permute.xlu1 %3711 }
0x2bb6   :  { %v3714_v13 = vmul.f32 %v5624_v2, %v3712_v3 }
0x2bb8   :  { %3716 = vrot.lane.b32.xlu0 %v3714_v13, %s5680_s4 }
0x2c2a   :  { %v3717_v28 = vpop.permute.xlu0 %3716 }
0x2c2b   :  { %v6819_v33 = vadd.f32 %v3717_v28, %v3709_v27 }
0x2c2d   :  { %5625 = vtanh.f32 %v6819_v33  ;;  %3727 = vrot.lane.b32.xlu1 %v6819_v33, %s5679_s30 }
0x2c3a   :  { %v5626_v34 = vpop.eup %5625 }
0x2c3b   :  { %3722 = vrot.lane.b32.xlu0 %v5626_v34, %s5678_s27 }
0x2c9f   :  { %v3728_v63 = vpop.permute.xlu1 %3727 }
0x2ca0   :  { %5445 = vmatmul.mubr.msk.f32.vlgmr.msra.gmra.mxu1 %vm185_vm3, %v3728_v63 }
0x2ca1   :  { %5448 = vmatpush3.msra.mxu1 %v6485_v25  ;;  %5455 = vmatprep.mubr.msk.f32.mxu1 %vm5677_vm2, %v5676_v0 }
0x2ca2   :  { %5449 = vmatprep.subr.mxu1 %v5676_v0 }
0x2ca3   :  { %5450 = vmatpush3.msra.mxu1 %v6494_v39 }
0x2ca4   :  { %5451 = vmatprep.subr.mxu1 %v5676_v0 }
0x2ca5   :  { %5452 = vmatpush3.msra.mxu1 %v6501_v59 }
0x2ca6   :  { %5453 = vmatprep.subr.mxu1 %v5676_v0 }
0x2ca7   :  { %5454 = vmatpush3.msra.mxu1 %v6508_v40 }
0x2ca8   :  { %5469 = vmatprep.subr.mxu1 %v5676_v0 }
0x2cad   :  { %v3723_v16 = vpop.permute.xlu0 %3722 }
0x2cae   :  { %v3725_v20 = vmul.f32 %v5624_v2, %v3723_v16 }
0x2cb0   :  { %4175 = vrot.lane.b32.xlu1 %v3725_v20, %s5678_s27 }
0x2d60   :  { %v3797_v17 = vpop.f32.mrf.mxu1 }
0x2d61   :  { %v3798_v31 = vadd.f32 %v6516_v11, %v3797_v17 }
0x2d62   :  { %v5446_v57 = vpop.f32.mrf.mxu1 }
0x2d63   :  { %v3801_v49 = vmax.f32 %v3798_v31, 0.0 }
0x2d65   :  { %5456 = vmatmul.mubr.msk.f32.vlgmr.msra.gmra.mxu1 %vm185_vm3, %v3801_v49 }
0x2d66   :  { %5470 = vmatpush3.msra.mxu1 %v6523_v51  ;;  %5477 = vmatprep.mubr.msk.f32.mxu1 %vm5677_vm2, %v5676_v0 }
0x2d67   :  { %5471 = vmatprep.subr.mxu1 %v5676_v0 }
0x2d68   :  { %5472 = vmatpush3.msra.mxu1 %v6532_v53 }
0x2d69   :  { %5473 = vmatprep.subr.mxu1 %v5676_v0 }
0x2d6a   :  { %5474 = vmatpush3.msra.mxu1 %v6539_v46 }
0x2d6b   :  { %5475 = vmatprep.subr.mxu1 %v5676_v0 }
0x2d6c   :  { %5476 = vmatpush3.msra.mxu1 %v6546_v47 }
0x2d6d   :  { %5491 = vmatprep.subr.mxu1 %v5676_v0 }
0x2e25   :  { %v3871_v22 = vpop.f32.mrf.mxu1 }
0x2e26   :  { %v3872_v51 = vadd.f32 %v6553_v52, %v3871_v22 }
0x2e27   :  { %v5457_v21 = vpop.f32.mrf.mxu1 }
0x2e28   :  { %v3875_v58 = vmax.f32 %v3872_v51, 0.0 }
0x2e2a   :  { %5467 = vmatmul.mubr.msk.f32.vlgmr.msra.gmra.mxu0 %vm185_vm3, %v3875_v58 }
0x2e2b   :  { %5481 = vmatpush3.msra.mxu0 %v6560_v4  ;;  %5488 = vmatprep.mubr.msk.f32.mxu0 %vm5677_vm2, %v5676_v0 }
0x2e2c   :  { %5482 = vmatprep.subr.mxu0 %v5676_v0 }
0x2e2d   :  { %5483 = vmatpush3.msra.mxu0 %v6569_v5 }
0x2e2e   :  { %5484 = vmatprep.subr.mxu0 %v5676_v0 }
0x2e2f   :  { %5485 = vmatpush3.msra.mxu0 %v6576_v6 }
0x2e30   :  { %5486 = vmatprep.subr.mxu0 %v5676_v0 }
0x2e31   :  { %5487 = vmatpush3.msra.mxu0 %v6583_v7 }
0x2e32   :  { %5502 = vmatprep.subr.mxu0 %v5676_v0 }
0x2eea   :  { %v3945_v53 = vpop.f32.mrf.mxu0 }
0x2eeb   :  { %v3946_v46 = vadd.f32 %v6590_v14, %v3945_v53 }
0x2eec   :  { %v5468_v47 = vpop.f32.mrf.mxu0 }
0x2eed   :  { %5627 = vtanh.f32 %v3946_v46 }
0x2efa   :  { %v5628_v4 = vpop.eup %5627 }
0x2efb   :  { %v3950_v32 = vmul.f32 2.0, %v5628_v4  ;;  %5478 = vmatmul.mubr.msk.f32.vlgmr.msra.gmra.mxu1 %vm185_vm3, %v5628_v4 }
0x2efc   :  { %5492 = vmatpush3.msra.mxu1 %v6597_v55  ;;  %5499 = vmatprep.mubr.msk.f32.mxu1 %vm5677_vm2, %v5676_v0 }
0x2efd   :  { %4573 = vst.msk [vmem:[%s6948_s3 + $0x18] sm:$0xf] %vm647_vm4, %v3950_v32  ;;  %5493 = vmatprep.subr.mxu1 %v5676_v0 }
0x2efe   :  { %5494 = vmatpush3.msra.mxu1 %v6610_v56 }
0x2eff   :  { %5495 = vmatprep.subr.mxu1 %v5676_v0 }
0x2f00   :  { %5496 = vmatpush3.msra.mxu1 %v6617_v61 }
0x2f01   :  { %5497 = vmatprep.subr.mxu1 %v5676_v0 }
0x2f02   :  { %5498 = vmatpush3.msra.mxu1 %v6624_v62 }
0x2f03   :  { %5521 = vmatprep.subr.mxu1 %v5676_v0 }
0x2fbb   :  { %v4022_v5 = vpop.f32.mrf.mxu1 }
0x2fbc   :  { %v4023_v6 = vadd.f32 %v6631_v10, %v4022_v5 }
0x2fbd   :  { %v5479_v7 = vpop.f32.mrf.mxu1 }
0x2fbe   :  { %v4026_v55 = vmax.f32 %v4023_v6, 0.0 }
0x2fc0   :  { %5489 = vmatmul.mubr.msk.f32.vlgmr.msra.gmra.mxu0 %vm185_vm3, %v4026_v55 }
0x2fc1   :  { %5503 = vmatpush3.msra.mxu0 %v6638_v23  ;;  %5518 = vmatprep.mubr.msk.f32.mxu0 %vm5677_vm2, %v5676_v0 }
0x2fc2   :  { %5504 = vmatprep.subr.mxu0 %v5676_v0 }
0x2fc3   :  { %5505 = vmatpush3.msra.mxu0 %v6647_v24 }
0x2fc4   :  { %5506 = vmatprep.subr.mxu0 %v5676_v0 }
0x2fc5   :  { %5507 = vmatpush3.msra.mxu0 %v6654_v29 }
0x2fc6   :  { %5508 = vmatprep.subr.mxu0 %v5676_v0 }
0x2fc7   :  { %5509 = vmatpush3.msra.mxu0 %v6661_v30 }
0x2fc8   :  { %5510 = vmatprep.subr.mxu0 %v5676_v0 }
0x2fc9   :  { %5511 = vmatpush3.msra.mxu0 %v6376_v15 }
0x2fca   :  { %5512 = vmatprep.subr.mxu0 %v5676_v0 }
0x2fcb   :  { %5513 = vmatpush3.msra.mxu0 %v6383_v18 }
0x2fcc   :  { %5514 = vmatprep.subr.mxu0 %v5676_v0 }
0x2fcd   :  { %5515 = vmatpush3.msra.mxu0 %v6390_v19  ;;  %v4176_v19 = vpop.permute.xlu1 %4175 }
0x2fce   :  { %5516 = vmatprep.subr.mxu0 %v5676_v0 }
0x2fcf   :  { %5517 = vmatpush3.msra.mxu0 %v6397_v26 }
0x2fd0   :  { %5543 = vmatprep.subr.mxu0 %v5676_v0 }
0x3080   :  { %v4096_v56 = vpop.f32.mrf.mxu0 }
0x3081   :  { %v4097_v61 = vadd.f32 %v6676_v36, %v4096_v56 }
0x3082   :  { %v5490_v62 = vpop.f32.mrf.mxu0 }
0x3083   :  { %v4100_v10 = vmax.f32 %v4097_v61, 0.0 }
0x3085   :  { %5500 = vmatmul.mubr.msk.f32.vlgmr.msra.gmra.mxu1 %vm185_vm3, %v4100_v10 }
0x3086   :  { %5522 = vmatpush3.msra.mxu1 %v6406_v35  ;;  %5529 = vmatprep.mubr.msk.f32.mxu1 %vm5677_vm2, %v5676_v0 }
0x3087   :  { %5523 = vmatprep.subr.mxu1 %v5676_v0 }
0x3088   :  { %5524 = vmatpush3.msra.mxu1 %v6415_v37 }
0x3089   :  { %5525 = vmatprep.subr.mxu1 %v5676_v0 }
0x308a   :  { %5526 = vmatpush3.msra.mxu1 %v6422_v38 }
0x308b   :  { %5527 = vmatprep.subr.mxu1 %v5676_v0 }
0x308c   :  { %5528 = vmatpush3.msra.mxu1 %v6429_v54 }
0x308d   :  { %5532 = vmatprep.subr.mxu1 %v5676_v0 }
0x3145   :  { %v4170_v15 = vpop.f32.mrf.mxu1 }
0x3146   :  { %v4171_v18 = vadd.f32 %v6693_v41, %v4170_v15 }
0x3147   :  { %v5501_v26 = vpop.f32.mrf.mxu1 }
0x3148   :  { %v4178_v35 = vsel %vm185_vm3, %v4171_v18, %v4176_v19 }
0x3149   :  { %5519 = vmatmul.mubr.msk.f32.vlgmr.msra.gmra.mxu0 %vm875_vm5, %v4178_v35 }
0x314a   :  { %5544 = vmatpush3.msra.mxu0 %v6439_v1  ;;  %5551 = vmatprep.mubr.msk.f32.mxu0 %vm5677_vm2, %v5676_v0 }
0x314b   :  { %5545 = vmatprep.subr.mxu0 %v5676_v0 }
0x314c   :  { %5546 = vmatpush3.msra.mxu0 %v6448_v43 }
0x314d   :  { %5547 = vmatprep.subr.mxu0 %v5676_v0 }
0x314e   :  { %5548 = vmatpush3.msra.mxu0 %v6455_v8 }
0x314f   :  { %5549 = vmatprep.subr.mxu0 %v5676_v0 }
0x3150   :  { %5550 = vmatpush3.msra.mxu0 %v6462_v9 }
0x3209   :  { %v4248_v37 = vpop.f32.mrf.mxu0 }
0x320a   :  { %v4249_v38 = vadd.f32 %v6469_v12, %v4248_v37 }
0x320b   :  { %v5520_v54 = vpop.f32.mrf.mxu0 }
0x320c   :  { %5629 = vtanh.f32 %v4249_v38  ;;  %v4578_v23 = vmul.f32 -1.442695, %v4249_v38 }
0x320e   :  { %5631 = vpow2.f32 %v4578_v23 }
0x3219   :  { %v5630_v1 = vpop.eup %5629 }
0x321a   :  { %4261 = vrot.lane.b32.xlu0 %v5630_v1, %s5678_s27 }
0x321b   :  { %v5632_v24 = vpop.eup %5631 }
0x321c   :  { %v4255_v43 = vadd.f32 1.0, %v5632_v24 }
0x321e   :  { %5633 = vrcp.f32 %v4255_v43 }
0x322b   :  { %v5634_v29 = vpop.eup %5633 }
0x322c   :  { %v4259_v9 = vmul.f32 %v5634_v29, %v6819_v33 }
0x328c   :  { %v4262_v30 = vpop.permute.xlu0 %4261 }
0x328d   :  { %v4264_v8 = vmul.f32 %v5634_v29, %v4262_v30 }
0x328f   :  { %4266 = vrot.lane.b32.xlu1 %v4264_v8, %s5680_s4 }
0x3301   :  { %v4267_v36 = vpop.permute.xlu1 %4266 }
0x3302   :  { %v4269_v41 = vadd.f32 %v4267_v36, %v4259_v9 }
0x3304   :  { %4271 = vrot.lane.b32.xlu0 %v4269_v41, %s5679_s30 }
0x3376   :  { %v4272_v12 = vpop.permute.xlu0 %4271 }
0x3377   :  { %5530 = vmatmul.mubr.msk.f32.vlgmr.msra.gmra.mxu1 %vm185_vm3, %v4272_v12 }
0x3378   :  { %5533 = vmatpush3.msra.mxu1 %v6485_v25  ;;  %5540 = vmatprep.mubr.msk.f32.mxu1 %vm5677_vm2, %v5676_v0 }
0x3379   :  { %5534 = vmatprep.subr.mxu1 %v5676_v0 }
0x337a   :  { %5535 = vmatpush3.msra.mxu1 %v6494_v39 }
0x337b   :  { %5536 = vmatprep.subr.mxu1 %v5676_v0 }
0x337c   :  { %5537 = vmatpush3.msra.mxu1 %v6501_v59 }
0x337d   :  { %5538 = vmatprep.subr.mxu1 %v5676_v0 }
0x337e   :  { %5539 = vmatpush3.msra.mxu1 %v6508_v40 }
0x3437   :  { %v4341_v42 = vpop.f32.mrf.mxu1 }
0x3438   :  { %v4342_v45 = vadd.f32 %v6516_v11, %v4341_v42 }
0x3439   :  { %v5531_v44 = vpop.f32.mrf.mxu1 }
0x343a   :  { %v4345_v25 = vmax.f32 %v4342_v45, 0.0 }
0x343c   :  { %5541 = vmatmul.mubr.msk.f32.vlgmr.msra.gmra.mxu1 %vm185_vm3, %v4345_v25 }
0x34fc   :  { %v4415_v50 = vpop.f32.mrf.mxu1 }
0x34fd   :  { %v4416_v48 = vadd.f32 %v6553_v52, %v4415_v50 }
0x34fe   :  { %v5542_v60 = vpop.f32.mrf.mxu1 }
0x34ff   :  { %v4419_v39 = vmax.f32 %v4416_v48, 0.0 }
0x3501   :  { %5552 = vmatmul.mubr.msk.f32.vlgmr.msra.gmra.mxu0 %vm185_vm3, %v4419_v39 }
0x35c1   :  { %v4489_v2 = vpop.f32.mrf.mxu0 }
0x35c2   :  { %v4490_v59 = vadd.f32 %v6590_v14, %v4489_v2 }
0x35c3   :  { %v5553_v0 = vpop.f32.mrf.mxu0 }
0x35c4   :  { %5635 = vtanh.f32 %v4490_v59 }
0x35d1   :  { %v5636_v40 = vpop.eup %5635 }
0x35d2   :  { %v4494_v3 = vmul.f32 2.0, %v5636_v40 }
0x35d4   :  { %4582 = vst.msk [vmem:[%s6948_s3 + $0x1c] sm:$0xf] %vm647_vm4, %v4494_v3 }

</bundles_post_ra>
